<compile_context>
chip_gen: v6e
topology: v6e:2x2x1
jax: 0.10.0
libtpu: 0.0.40
codegen_flags: <defaults>
</compile_context>

<pallas_src>
import jax
import jax.numpy as jnp
from jax.experimental import pallas as pl
from jax.experimental.pallas import tpu as pltpu


def gru_recurrence_kernel(gi_ref, whh_ref, bhh_ref, hall_ref, hfin_ref, h_scratch):
    """One grid step == TBLK GRU time steps; hidden state carried in VMEM scratch.

    gi_ref:  (TBLK, Bp, 3*Hp) precomputed input projections (gate-lane-aligned)
    whh_ref: (Hp, 3*Hp)       padded W_hh^T
    bhh_ref: (1, 3*Hp)        padded b_hh
    hall_ref:(TBLK, Bp, Hp)   all hidden states for this time block
    hfin_ref:(Bp, Hp)         final hidden state (written once, at last grid step)
    """
    @pl.when(pl.program_id(0) == 0)
    def _():
        h_scratch[...] = jnp.zeros_like(h_scratch)   # pre_hidden=None -> zeros

    whh = whh_ref[...]            # resident weights (constant across grid)
    bhh = bhh_ref[...]
    hp = whh.shape[0]
    tblk = gi_ref.shape[0]

    def step(t, h):
        gi = gi_ref[t]                                                  # (Bp, 3*Hp)
        gh = jnp.dot(h, whh, preferred_element_type=jnp.float32) + bhh  # (Bp, 3*Hp)
        # PyTorch gate order r, z, n; each gate occupies its own 128-aligned Hp block.
        r = jax.nn.sigmoid(gi[:, 0:hp] + gh[:, 0:hp])
        z = jax.nn.sigmoid(gi[:, hp:2 * hp] + gh[:, hp:2 * hp])
        n = jnp.tanh(gi[:, 2 * hp:3 * hp] + r * gh[:, 2 * hp:3 * hp])
        h_new = (1.0 - z) * n + z * h
        hall_ref[t] = h_new.astype(hall_ref.dtype)
        return h_new

    h_last = jax.lax.fori_loop(0, tblk, step, h_scratch[...], unroll=True)
    h_scratch[...] = h_last

    @pl.when(pl.program_id(0) == pl.num_programs(0) - 1)
    def _():
        hfin_ref[...] = h_last.astype(hfin_ref.dtype)


def gru_model_forward(X, params, tblk=None):
    """Pallas equivalent of gruModel.forward(X, pre_hidden=None).

    X: (B, T) int32 token ids.
    Returns (out, hidden): out (B, T, O) batch_first, hidden (1, B, H).
    """
    emb_table = params["embedding"]          # (V, E)
    w_ih, w_hh = params["w_ih"], params["w_hh"]     # (3H, E), (3H, H)
    b_ih, b_hh = params["b_ih"], params["b_hh"]     # (3H,), (3H,)
    w_fc, b_fc = params["w_fc"], params["b_fc"]     # (O, H), (O,)

    B, T = X.shape
    V, E = emb_table.shape
    H = w_hh.shape[1]
    O = w_fc.shape[0]

    LANE, SUB = 128, 8
    Hp = pl.cdiv(H, LANE) * LANE             # lane-aligned hidden width
    Op = pl.cdiv(O, LANE) * LANE             # lane-dense FC output width
    Bp = pl.cdiv(B, SUB) * SUB               # sublane-aligned batch
    GH = 3 * Hp

    if tblk is None:
        tblk = T if T <= 32 else 32          # time steps per grid step
    assert T % tblk == 0, "tblk must divide T"
    n_tblocks = T // tblk

    hipr = jax.lax.Precision.HIGHEST

    # --- glue: time-major embedding gather (transpose the int ids, not activations) ---
    x_tbe = jnp.take(emb_table, X.T, axis=0).astype(jnp.float32)      # (T, B, E)
    if Bp != B:
        x_tbe = jnp.pad(x_tbe, ((0, 0), (0, Bp - B), (0, 0)))          # (T, Bp, E)

    # --- lane-aligned, zero-padded gate layout -----------------------------------------
    def pad_gate_cols(w_t, n_rows):
        # w_t: (rows, 3*H) -> (n_rows, 3*Hp); gate g lives at columns [g*Hp, g*Hp+H).
        out = jnp.zeros((n_rows, GH), jnp.float32)
        for g in range(3):
            out = out.at[:w_t.shape[0], g * Hp:g * Hp + H].set(w_t[:, g * H:(g + 1) * H])
        return out

    def pad_gate_bias(b):
        out = jnp.zeros((1, GH), jnp.float32)
        for g in range(3):
            out = out.at[0, g * Hp:g * Hp + H].set(b[g * H:(g + 1) * H])
        return out

    wih_t = pad_gate_cols(w_ih.T, E)      # (E, 3*Hp)
    whh_t = pad_gate_cols(w_hh.T, Hp)     # (Hp, 3*Hp), padded rows/cols are zero
    bih = pad_gate_bias(b_ih)             # (1, 3*Hp)
    bhh = pad_gate_bias(b_hh)             # (1, 3*Hp)

    # --- hoisted (non-recurrent) input projection: one big matmul ----------------------
    gi = (jnp.dot(x_tbe.reshape(T * Bp, E), wih_t, precision=hipr)
          + bih).reshape(T, Bp, GH)

    # --- recurrent Pallas kernel --------------------------------------------------------
    full = lambda i: (0, 0)
    grid_spec = pltpu.PrefetchScalarGridSpec(
        num_scalar_prefetch=0,
        grid=(n_tblocks,),
        in_specs=[
            pl.BlockSpec((tblk, Bp, GH), lambda i: (i, 0, 0)),   # gi time-block
            pl.BlockSpec((Hp, GH), full),                        # W_hh^T (padded)
            pl.BlockSpec((1, GH), full),                         # b_hh   (padded)
        ],
        out_specs=[
            pl.BlockSpec((tblk, Bp, Hp), lambda i: (i, 0, 0)),   # all hidden states
            pl.BlockSpec((Bp, Hp), full),                        # final hidden
        ],
        scratch_shapes=[pltpu.VMEM((Bp, Hp), jnp.float32)],
    )

    hall, hfin = pl.pallas_call(
        gru_recurrence_kernel,
        grid_spec=grid_spec,
        out_shape=[
            jax.ShapeDtypeStruct((T, Bp, Hp), jnp.float32),
            jax.ShapeDtypeStruct((Bp, Hp), jnp.float32),
        ],
        compiler_params=pltpu.CompilerParams(
            dimension_semantics=("arbitrary",)),   # time must stay sequential
    )(gi, whh_t, bhh)

    # --- hoisted FC head: one big lane-dense matmul -------------------------------------
    wfc_t = jnp.zeros((Hp, Op), jnp.float32).at[:H, :O].set(w_fc.T)
    bfc = jnp.zeros((1, Op), jnp.float32).at[0, :O].set(b_fc)
    logits = (jnp.dot(hall.reshape(T * Bp, Hp), wfc_t, precision=hipr)
              + bfc).reshape(T, Bp, Op)

    out = jnp.transpose(logits[:, :B, :O], (1, 0, 2))   # (B, T, O) batch_first
    hidden = hfin[:B, :H][None]                         # (1, B, H) num_layers=1
    return out, hidden


def reference_forward(X, params):
    """Pure-JAX reference (mirrors torch.nn.GRU + nn.Linear) for verification."""
    hipr = jax.lax.Precision.HIGHEST
    emb = jnp.take(params["embedding"], X, axis=0)          # (B, T, E)
    H = params["w_hh"].shape[1]
    w_ih, w_hh = params["w_ih"], params["w_hh"]
    b_ih, b_hh = params["b_ih"], params["b_hh"]

    def step(h, x_t):
        gi = jnp.dot(x_t, w_ih.T, precision=hipr) + b_ih
        gh = jnp.dot(h, w_hh.T, precision=hipr) + b_hh
        i_r, i_z, i_n = gi[:, :H], gi[:, H:2 * H], gi[:, 2 * H:]
        h_r, h_z, h_n = gh[:, :H], gh[:, H:2 * H], gh[:, 2 * H:]
        r = jax.nn.sigmoid(i_r + h_r)
        z = jax.nn.sigmoid(i_z + h_z)
        n = jnp.tanh(i_n + r * h_n)
        h_new = (1.0 - z) * n + z * h
        return h_new, h_new

    B = X.shape[0]
    h0 = jnp.zeros((B, H), jnp.float32)
    h_last, hs = jax.lax.scan(step, h0, jnp.transpose(emb, (1, 0, 2)))
    output = jnp.transpose(hs, (1, 0, 2))                   # (B, T, H)
    out = jnp.dot(output, params["w_fc"].T, precision=hipr) + params["b_fc"]
    return out, h_last[None]


def init_params(key, input_dim, embedding_dim, hidden_dim, output_dim):
    """Deterministic param init (uniform +/- 1/sqrt(H), like PyTorch GRU)."""
    ks = jax.random.split(key, 7)
    s = 1.0 / jnp.sqrt(jnp.float32(hidden_dim))
    u = lambda k, shape: jax.random.uniform(k, shape, jnp.float32, -s, s)
    return {
        "embedding": jax.random.normal(ks[0], (input_dim, embedding_dim), jnp.float32),
        "w_ih": u(ks[1], (3 * hidden_dim, embedding_dim)),
        "w_hh": u(ks[2], (3 * hidden_dim, hidden_dim)),
        "b_ih": u(ks[3], (3 * hidden_dim,)),
        "b_hh": u(ks[4], (3 * hidden_dim,)),
        "w_fc": u(ks[5], (output_dim, hidden_dim)),
        "b_fc": u(ks[6], (output_dim,)),
    }
    # TODO(synk): nn.GRU dropout with num_layers=1 is a no-op in PyTorch; omitted.
    # TODO(synk): gruModel.generate() is a host-side sampling loop, not a kernel; omitted.


if __name__ == "__main__":
    # Small shapes consistent with the module:
    #   vocab (input_dim) = 64, embedding_dim = 16, hidden_dim = 32,
    #   output_dim = 64, batch = 2, seq_len = 8.
    V, E, H, O = 64, 16, 32, 64
    B, T = 2, 8

    key = jax.random.PRNGKey(0)
    kp, kx = jax.random.split(key)
    params = init_params(kp, V, E, H, O)
    X = jax.random.randint(kx, (B, T), 0, V, dtype=jnp.int32)

    out, hidden = gru_model_forward(X, params)
    jax.block_until_ready((out, hidden))

    ref_out, ref_hidden = reference_forward(X, params)
    assert out.shape == (B, T, O) and hidden.shape == (1, B, H)
    assert jnp.allclose(out, ref_out, atol=1e-4, rtol=1e-4)
    assert jnp.allclose(hidden, ref_hidden, atol=1e-4, rtol=1e-4)

    print("KERNEL_OK")
</pallas_src>

<mosaic_0001>
module attributes {stable_mosaic.version = 11 : i64} {
  func.func @gru_recurrence_kernel(%arg0: i32, %arg1: memref<8x8x384xf32, #tpu.memory_space<vmem>>, %arg2: memref<128x384xf32, #tpu.memory_space<vmem>>, %arg3: memref<1x384xf32, #tpu.memory_space<vmem>>, %arg4: memref<8x8x128xf32, #tpu.memory_space<vmem>>, %arg5: memref<8x128xf32, #tpu.memory_space<vmem>>, %arg6: memref<8x128xf32, #tpu.memory_space<vmem>>) attributes {dimension_semantics = [#tpu.dimension_semantics<arbitrary>], iteration_bounds = array<i64: 1>, scalar_prefetch = 0 : i64, scratch_operands = 1 : i64, tpu.core_type = #tpu.core_type<tc>, window_params = [{transform_indices = @transform_0, window_bounds = array<i64: 8, 8, 384>}, {pipeline_mode = #tpu.pipeline_mode<synchronous>, transform_indices = @transform_1, window_bounds = array<i64: 128, 384>}, {pipeline_mode = #tpu.pipeline_mode<synchronous>, transform_indices = @transform_2, window_bounds = array<i64: 1, 384>}, {transform_indices = @transform_3, window_bounds = array<i64: 8, 8, 128>}, {pipeline_mode = #tpu.pipeline_mode<synchronous>, transform_indices = @transform_4, window_bounds = array<i64: 8, 128>}]} {
    %c0_i32 = arith.constant 0 : i32
    %0 = arith.cmpi eq, %arg0, %c0_i32 : i32
    %1 = arith.extui %0 : i1 to i32
    %c0_i32_0 = arith.constant 0 : i32
    %2 = arith.cmpi ne, %1, %c0_i32_0 : i32
    scf.if %2 {
      %cst_74 = arith.constant 0.000000e+00 : f32
      %298 = vector.broadcast %cst_74 : f32 to vector<8x128xf32>
      %c0_75 = arith.constant 0 : index
      %c0_76 = arith.constant 0 : index
      %299 = vector.load %arg6[%c0_75, %c0_76] : memref<8x128xf32, #tpu.memory_space<vmem>>, vector<8x128xf32>
      tpu.vector_store %arg6[%c0_75, %c0_76], %298 {strides = array<i32>} : memref<8x128xf32, #tpu.memory_space<vmem>>, vector<8x128xf32>,
    } else {
    }
    %c0 = arith.constant 0 : index
    %c0_1 = arith.constant 0 : index
    %3 = vector.load %arg2[%c0, %c0_1] : memref<128x384xf32, #tpu.memory_space<vmem>>, vector<128x384xf32>
    %c0_2 = arith.constant 0 : index
    %c0_3 = arith.constant 0 : index
    %4 = vector.load %arg3[%c0_2, %c0_3] : memref<1x384xf32, #tpu.memory_space<vmem>>, vector<1x384xf32>
    %c0_4 = arith.constant 0 : index
    %c0_5 = arith.constant 0 : index
    %5 = vector.load %arg6[%c0_4, %c0_5] : memref<8x128xf32, #tpu.memory_space<vmem>>, vector<8x128xf32>
    %c0_i32_6 = arith.constant 0 : i32
    %6 = arith.index_cast %c0_i32_6 : i32 to index
    %c0_7 = arith.constant 0 : index
    %c0_8 = arith.constant 0 : index
    %7 = vector.load %arg1[%6, %c0_7, %c0_8] : memref<8x8x384xf32, #tpu.memory_space<vmem>>, vector<1x8x384xf32>
    %8 = vector.shape_cast %7 : vector<1x8x384xf32> to vector<8x384xf32>
    %cst = arith.constant dense<0.000000e+00> : vector<8x384xf32>
    %9 = tpu.matmul %5, %3, %cst {dimension_numbers = #tpu.dot_dimension_numbers<[1], [0], [0], [1], [0, 0, 1, 1], [], []>} : vector<8x128xf32>, vector<128x384xf32>, vector<8x384xf32> -> vector<8x384xf32>
    %10 = vector.broadcast %4 : vector<1x384xf32> to vector<8x384xf32>
    %11 = arith.addf %9, %10 : vector<8x384xf32>
    %12 = vector.extract_strided_slice %8 {offsets = [0, 0], sizes = [8, 128], strides = [1, 1]} : vector<8x384xf32> to vector<8x128xf32>
    %13 = vector.extract_strided_slice %11 {offsets = [0, 0], sizes = [8, 128], strides = [1, 1]} : vector<8x384xf32> to vector<8x128xf32>
    %14 = arith.addf %12, %13 : vector<8x128xf32>
    %15 = arith.negf %14 : vector<8x128xf32>
    %16 = math.exp %15 : vector<8x128xf32>
    %cst_9 = arith.constant 1.000000e+00 : f32
    %17 = vector.broadcast %cst_9 : f32 to vector<8x128xf32>
    %18 = arith.addf %17, %16 : vector<8x128xf32>
    %19 = arith.divf %17, %18 : vector<8x128xf32>
    %20 = vector.extract_strided_slice %8 {offsets = [0, 128], sizes = [8, 128], strides = [1, 1]} : vector<8x384xf32> to vector<8x128xf32>
    %21 = vector.extract_strided_slice %11 {offsets = [0, 128], sizes = [8, 128], strides = [1, 1]} : vector<8x384xf32> to vector<8x128xf32>
    %22 = arith.addf %20, %21 : vector<8x128xf32>
    %23 = arith.negf %22 : vector<8x128xf32>
    %24 = math.exp %23 : vector<8x128xf32>
    %cst_10 = arith.constant 1.000000e+00 : f32
    %25 = vector.broadcast %cst_10 : f32 to vector<8x128xf32>
    %26 = arith.addf %25, %24 : vector<8x128xf32>
    %27 = arith.divf %25, %26 : vector<8x128xf32>
    %28 = vector.extract_strided_slice %8 {offsets = [0, 256], sizes = [8, 128], strides = [1, 1]} : vector<8x384xf32> to vector<8x128xf32>
    %29 = vector.extract_strided_slice %11 {offsets = [0, 256], sizes = [8, 128], strides = [1, 1]} : vector<8x384xf32> to vector<8x128xf32>
    %30 = arith.mulf %19, %29 : vector<8x128xf32>
    %31 = arith.addf %28, %30 : vector<8x128xf32>
    %32 = math.tanh %31 : vector<8x128xf32>
    %cst_11 = arith.constant 1.000000e+00 : f32
    %33 = vector.broadcast %cst_11 : f32 to vector<8x128xf32>
    %34 = arith.subf %33, %27 : vector<8x128xf32>
    %35 = arith.mulf %34, %32 : vector<8x128xf32>
    %36 = arith.mulf %27, %5 : vector<8x128xf32>
    %37 = arith.addf %35, %36 : vector<8x128xf32>
    %38 = arith.index_cast %c0_i32_6 : i32 to index
    %c0_12 = arith.constant 0 : index
    %c0_13 = arith.constant 0 : index
    %39 = vector.load %arg4[%38, %c0_12, %c0_13] : memref<8x8x128xf32, #tpu.memory_space<vmem>>, vector<1x8x128xf32>
    %40 = vector.shape_cast %39 : vector<1x8x128xf32> to vector<8x128xf32>
    %41 = vector.shape_cast %37 : vector<8x128xf32> to vector<1x8x128xf32>
    tpu.vector_store %arg4[%38, %c0_12, %c0_13], %41 {strides = array<i32>} : memref<8x8x128xf32, #tpu.memory_space<vmem>>, vector<1x8x128xf32>,
    %c1_i32 = arith.constant 1 : i32
    %42 = arith.index_cast %c1_i32 : i32 to index
    %c0_14 = arith.constant 0 : index
    %c0_15 = arith.constant 0 : index
    %43 = vector.load %arg1[%42, %c0_14, %c0_15] : memref<8x8x384xf32, #tpu.memory_space<vmem>>, vector<1x8x384xf32>
    %44 = vector.shape_cast %43 : vector<1x8x384xf32> to vector<8x384xf32>
    %cst_16 = arith.constant dense<0.000000e+00> : vector<8x384xf32>
    %45 = tpu.matmul %37, %3, %cst_16 {dimension_numbers = #tpu.dot_dimension_numbers<[1], [0], [0], [1], [0, 0, 1, 1], [], []>} : vector<8x128xf32>, vector<128x384xf32>, vector<8x384xf32> -> vector<8x384xf32>
    %46 = vector.broadcast %4 : vector<1x384xf32> to vector<8x384xf32>
    %47 = arith.addf %45, %46 : vector<8x384xf32>
    %48 = vector.extract_strided_slice %44 {offsets = [0, 0], sizes = [8, 128], strides = [1, 1]} : vector<8x384xf32> to vector<8x128xf32>
    %49 = vector.extract_strided_slice %47 {offsets = [0, 0], sizes = [8, 128], strides = [1, 1]} : vector<8x384xf32> to vector<8x128xf32>
    %50 = arith.addf %48, %49 : vector<8x128xf32>
    %51 = arith.negf %50 : vector<8x128xf32>
    %52 = math.exp %51 : vector<8x128xf32>
    %cst_17 = arith.constant 1.000000e+00 : f32
    %53 = vector.broadcast %cst_17 : f32 to vector<8x128xf32>
    %54 = arith.addf %53, %52 : vector<8x128xf32>
    %55 = arith.divf %53, %54 : vector<8x128xf32>
    %56 = vector.extract_strided_slice %44 {offsets = [0, 128], sizes = [8, 128], strides = [1, 1]} : vector<8x384xf32> to vector<8x128xf32>
    %57 = vector.extract_strided_slice %47 {offsets = [0, 128], sizes = [8, 128], strides = [1, 1]} : vector<8x384xf32> to vector<8x128xf32>
    %58 = arith.addf %56, %57 : vector<8x128xf32>
    %59 = arith.negf %58 : vector<8x128xf32>
    %60 = math.exp %59 : vector<8x128xf32>
    %cst_18 = arith.constant 1.000000e+00 : f32
    %61 = vector.broadcast %cst_18 : f32 to vector<8x128xf32>
    %62 = arith.addf %61, %60 : vector<8x128xf32>
    %63 = arith.divf %61, %62 : vector<8x128xf32>
    %64 = vector.extract_strided_slice %44 {offsets = [0, 256], sizes = [8, 128], strides = [1, 1]} : vector<8x384xf32> to vector<8x128xf32>
    %65 = vector.extract_strided_slice %47 {offsets = [0, 256], sizes = [8, 128], strides = [1, 1]} : vector<8x384xf32> to vector<8x128xf32>
    %66 = arith.mulf %55, %65 : vector<8x128xf32>
    %67 = arith.addf %64, %66 : vector<8x128xf32>
    %68 = math.tanh %67 : vector<8x128xf32>
    %cst_19 = arith.constant 1.000000e+00 : f32
    %69 = vector.broadcast %cst_19 : f32 to vector<8x128xf32>
    %70 = arith.subf %69, %63 : vector<8x128xf32>
    %71 = arith.mulf %70, %68 : vector<8x128xf32>
    %72 = arith.mulf %63, %37 : vector<8x128xf32>
    %73 = arith.addf %71, %72 : vector<8x128xf32>
    %74 = arith.index_cast %c1_i32 : i32 to index
    %c0_20 = arith.constant 0 : index
    %c0_21 = arith.constant 0 : index
    %75 = vector.load %arg4[%74, %c0_20, %c0_21] : memref<8x8x128xf32, #tpu.memory_space<vmem>>, vector<1x8x128xf32>
    %76 = vector.shape_cast %75 : vector<1x8x128xf32> to vector<8x128xf32>
    %77 = vector.shape_cast %73 : vector<8x128xf32> to vector<1x8x128xf32>
    tpu.vector_store %arg4[%74, %c0_20, %c0_21], %77 {strides = array<i32>} : memref<8x8x128xf32, #tpu.memory_space<vmem>>, vector<1x8x128xf32>,
    %c2_i32 = arith.constant 2 : i32
    %78 = arith.index_cast %c2_i32 : i32 to index
    %c0_22 = arith.constant 0 : index
    %c0_23 = arith.constant 0 : index
    %79 = vector.load %arg1[%78, %c0_22, %c0_23] : memref<8x8x384xf32, #tpu.memory_space<vmem>>, vector<1x8x384xf32>
    %80 = vector.shape_cast %79 : vector<1x8x384xf32> to vector<8x384xf32>
    %cst_24 = arith.constant dense<0.000000e+00> : vector<8x384xf32>
    %81 = tpu.matmul %73, %3, %cst_24 {dimension_numbers = #tpu.dot_dimension_numbers<[1], [0], [0], [1], [0, 0, 1, 1], [], []>} : vector<8x128xf32>, vector<128x384xf32>, vector<8x384xf32> -> vector<8x384xf32>
    %82 = vector.broadcast %4 : vector<1x384xf32> to vector<8x384xf32>
    %83 = arith.addf %81, %82 : vector<8x384xf32>
    %84 = vector.extract_strided_slice %80 {offsets = [0, 0], sizes = [8, 128], strides = [1, 1]} : vector<8x384xf32> to vector<8x128xf32>
    %85 = vector.extract_strided_slice %83 {offsets = [0, 0], sizes = [8, 128], strides = [1, 1]} : vector<8x384xf32> to vector<8x128xf32>
    %86 = arith.addf %84, %85 : vector<8x128xf32>
    %87 = arith.negf %86 : vector<8x128xf32>
    %88 = math.exp %87 : vector<8x128xf32>
    %cst_25 = arith.constant 1.000000e+00 : f32
    %89 = vector.broadcast %cst_25 : f32 to vector<8x128xf32>
    %90 = arith.addf %89, %88 : vector<8x128xf32>
    %91 = arith.divf %89, %90 : vector<8x128xf32>
    %92 = vector.extract_strided_slice %80 {offsets = [0, 128], sizes = [8, 128], strides = [1, 1]} : vector<8x384xf32> to vector<8x128xf32>
    %93 = vector.extract_strided_slice %83 {offsets = [0, 128], sizes = [8, 128], strides = [1, 1]} : vector<8x384xf32> to vector<8x128xf32>
    %94 = arith.addf %92, %93 : vector<8x128xf32>
    %95 = arith.negf %94 : vector<8x128xf32>
    %96 = math.exp %95 : vector<8x128xf32>
    %cst_26 = arith.constant 1.000000e+00 : f32
    %97 = vector.broadcast %cst_26 : f32 to vector<8x128xf32>
    %98 = arith.addf %97, %96 : vector<8x128xf32>
    %99 = arith.divf %97, %98 : vector<8x128xf32>
    %100 = vector.extract_strided_slice %80 {offsets = [0, 256], sizes = [8, 128], strides = [1, 1]} : vector<8x384xf32> to vector<8x128xf32>
    %101 = vector.extract_strided_slice %83 {offsets = [0, 256], sizes = [8, 128], strides = [1, 1]} : vector<8x384xf32> to vector<8x128xf32>
    %102 = arith.mulf %91, %101 : vector<8x128xf32>
    %103 = arith.addf %100, %102 : vector<8x128xf32>
    %104 = math.tanh %103 : vector<8x128xf32>
    %cst_27 = arith.constant 1.000000e+00 : f32
    %105 = vector.broadcast %cst_27 : f32 to vector<8x128xf32>
    %106 = arith.subf %105, %99 : vector<8x128xf32>
    %107 = arith.mulf %106, %104 : vector<8x128xf32>
    %108 = arith.mulf %99, %73 : vector<8x128xf32>
    %109 = arith.addf %107, %108 : vector<8x128xf32>
    %110 = arith.index_cast %c2_i32 : i32 to index
    %c0_28 = arith.constant 0 : index
    %c0_29 = arith.constant 0 : index
    %111 = vector.load %arg4[%110, %c0_28, %c0_29] : memref<8x8x128xf32, #tpu.memory_space<vmem>>, vector<1x8x128xf32>
    %112 = vector.shape_cast %111 : vector<1x8x128xf32> to vector<8x128xf32>
    %113 = vector.shape_cast %109 : vector<8x128xf32> to vector<1x8x128xf32>
    tpu.vector_store %arg4[%110, %c0_28, %c0_29], %113 {strides = array<i32>} : memref<8x8x128xf32, #tpu.memory_space<vmem>>, vector<1x8x128xf32>,
    %c3_i32 = arith.constant 3 : i32
    %114 = arith.index_cast %c3_i32 : i32 to index
    %c0_30 = arith.constant 0 : index
    %c0_31 = arith.constant 0 : index
    %115 = vector.load %arg1[%114, %c0_30, %c0_31] : memref<8x8x384xf32, #tpu.memory_space<vmem>>, vector<1x8x384xf32>
    %116 = vector.shape_cast %115 : vector<1x8x384xf32> to vector<8x384xf32>
    %cst_32 = arith.constant dense<0.000000e+00> : vector<8x384xf32>
    %117 = tpu.matmul %109, %3, %cst_32 {dimension_numbers = #tpu.dot_dimension_numbers<[1], [0], [0], [1], [0, 0, 1, 1], [], []>} : vector<8x128xf32>, vector<128x384xf32>, vector<8x384xf32> -> vector<8x384xf32>
    %118 = vector.broadcast %4 : vector<1x384xf32> to vector<8x384xf32>
    %119 = arith.addf %117, %118 : vector<8x384xf32>
    %120 = vector.extract_strided_slice %116 {offsets = [0, 0], sizes = [8, 128], strides = [1, 1]} : vector<8x384xf32> to vector<8x128xf32>
    %121 = vector.extract_strided_slice %119 {offsets = [0, 0], sizes = [8, 128], strides = [1, 1]} : vector<8x384xf32> to vector<8x128xf32>
    %122 = arith.addf %120, %121 : vector<8x128xf32>
    %123 = arith.negf %122 : vector<8x128xf32>
    %124 = math.exp %123 : vector<8x128xf32>
    %cst_33 = arith.constant 1.000000e+00 : f32
    %125 = vector.broadcast %cst_33 : f32 to vector<8x128xf32>
    %126 = arith.addf %125, %124 : vector<8x128xf32>
    %127 = arith.divf %125, %126 : vector<8x128xf32>
    %128 = vector.extract_strided_slice %116 {offsets = [0, 128], sizes = [8, 128], strides = [1, 1]} : vector<8x384xf32> to vector<8x128xf32>
    %129 = vector.extract_strided_slice %119 {offsets = [0, 128], sizes = [8, 128], strides = [1, 1]} : vector<8x384xf32> to vector<8x128xf32>
    %130 = arith.addf %128, %129 : vector<8x128xf32>
    %131 = arith.negf %130 : vector<8x128xf32>
    %132 = math.exp %131 : vector<8x128xf32>
    %cst_34 = arith.constant 1.000000e+00 : f32
    %133 = vector.broadcast %cst_34 : f32 to vector<8x128xf32>
    %134 = arith.addf %133, %132 : vector<8x128xf32>
    %135 = arith.divf %133, %134 : vector<8x128xf32>
    %136 = vector.extract_strided_slice %116 {offsets = [0, 256], sizes = [8, 128], strides = [1, 1]} : vector<8x384xf32> to vector<8x128xf32>
    %137 = vector.extract_strided_slice %119 {offsets = [0, 256], sizes = [8, 128], strides = [1, 1]} : vector<8x384xf32> to vector<8x128xf32>
    %138 = arith.mulf %127, %137 : vector<8x128xf32>
    %139 = arith.addf %136, %138 : vector<8x128xf32>
    %140 = math.tanh %139 : vector<8x128xf32>
    %cst_35 = arith.constant 1.000000e+00 : f32
    %141 = vector.broadcast %cst_35 : f32 to vector<8x128xf32>
    %142 = arith.subf %141, %135 : vector<8x128xf32>
    %143 = arith.mulf %142, %140 : vector<8x128xf32>
    %144 = arith.mulf %135, %109 : vector<8x128xf32>
    %145 = arith.addf %143, %144 : vector<8x128xf32>
    %146 = arith.index_cast %c3_i32 : i32 to index
    %c0_36 = arith.constant 0 : index
    %c0_37 = arith.constant 0 : index
    %147 = vector.load %arg4[%146, %c0_36, %c0_37] : memref<8x8x128xf32, #tpu.memory_space<vmem>>, vector<1x8x128xf32>
    %148 = vector.shape_cast %147 : vector<1x8x128xf32> to vector<8x128xf32>
    %149 = vector.shape_cast %145 : vector<8x128xf32> to vector<1x8x128xf32>
    tpu.vector_store %arg4[%146, %c0_36, %c0_37], %149 {strides = array<i32>} : memref<8x8x128xf32, #tpu.memory_space<vmem>>, vector<1x8x128xf32>,
    %c4_i32 = arith.constant 4 : i32
    %150 = arith.index_cast %c4_i32 : i32 to index
    %c0_38 = arith.constant 0 : index
    %c0_39 = arith.constant 0 : index
    %151 = vector.load %arg1[%150, %c0_38, %c0_39] : memref<8x8x384xf32, #tpu.memory_space<vmem>>, vector<1x8x384xf32>
    %152 = vector.shape_cast %151 : vector<1x8x384xf32> to vector<8x384xf32>
    %cst_40 = arith.constant dense<0.000000e+00> : vector<8x384xf32>
    %153 = tpu.matmul %145, %3, %cst_40 {dimension_numbers = #tpu.dot_dimension_numbers<[1], [0], [0], [1], [0, 0, 1, 1], [], []>} : vector<8x128xf32>, vector<128x384xf32>, vector<8x384xf32> -> vector<8x384xf32>
    %154 = vector.broadcast %4 : vector<1x384xf32> to vector<8x384xf32>
    %155 = arith.addf %153, %154 : vector<8x384xf32>
    %156 = vector.extract_strided_slice %152 {offsets = [0, 0], sizes = [8, 128], strides = [1, 1]} : vector<8x384xf32> to vector<8x128xf32>
    %157 = vector.extract_strided_slice %155 {offsets = [0, 0], sizes = [8, 128], strides = [1, 1]} : vector<8x384xf32> to vector<8x128xf32>
    %158 = arith.addf %156, %157 : vector<8x128xf32>
    %159 = arith.negf %158 : vector<8x128xf32>
    %160 = math.exp %159 : vector<8x128xf32>
    %cst_41 = arith.constant 1.000000e+00 : f32
    %161 = vector.broadcast %cst_41 : f32 to vector<8x128xf32>
    %162 = arith.addf %161, %160 : vector<8x128xf32>
    %163 = arith.divf %161, %162 : vector<8x128xf32>
    %164 = vector.extract_strided_slice %152 {offsets = [0, 128], sizes = [8, 128], strides = [1, 1]} : vector<8x384xf32> to vector<8x128xf32>
    %165 = vector.extract_strided_slice %155 {offsets = [0, 128], sizes = [8, 128], strides = [1, 1]} : vector<8x384xf32> to vector<8x128xf32>
    %166 = arith.addf %164, %165 : vector<8x128xf32>
    %167 = arith.negf %166 : vector<8x128xf32>
    %168 = math.exp %167 : vector<8x128xf32>
    %cst_42 = arith.constant 1.000000e+00 : f32
    %169 = vector.broadcast %cst_42 : f32 to vector<8x128xf32>
    %170 = arith.addf %169, %168 : vector<8x128xf32>
    %171 = arith.divf %169, %170 : vector<8x128xf32>
    %172 = vector.extract_strided_slice %152 {offsets = [0, 256], sizes = [8, 128], strides = [1, 1]} : vector<8x384xf32> to vector<8x128xf32>
    %173 = vector.extract_strided_slice %155 {offsets = [0, 256], sizes = [8, 128], strides = [1, 1]} : vector<8x384xf32> to vector<8x128xf32>
    %174 = arith.mulf %163, %173 : vector<8x128xf32>
    %175 = arith.addf %172, %174 : vector<8x128xf32>
    %176 = math.tanh %175 : vector<8x128xf32>
    %cst_43 = arith.constant 1.000000e+00 : f32
    %177 = vector.broadcast %cst_43 : f32 to vector<8x128xf32>
    %178 = arith.subf %177, %171 : vector<8x128xf32>
    %179 = arith.mulf %178, %176 : vector<8x128xf32>
    %180 = arith.mulf %171, %145 : vector<8x128xf32>
    %181 = arith.addf %179, %180 : vector<8x128xf32>
    %182 = arith.index_cast %c4_i32 : i32 to index
    %c0_44 = arith.constant 0 : index
    %c0_45 = arith.constant 0 : index
    %183 = vector.load %arg4[%182, %c0_44, %c0_45] : memref<8x8x128xf32, #tpu.memory_space<vmem>>, vector<1x8x128xf32>
    %184 = vector.shape_cast %183 : vector<1x8x128xf32> to vector<8x128xf32>
    %185 = vector.shape_cast %181 : vector<8x128xf32> to vector<1x8x128xf32>
    tpu.vector_store %arg4[%182, %c0_44, %c0_45], %185 {strides = array<i32>} : memref<8x8x128xf32, #tpu.memory_space<vmem>>, vector<1x8x128xf32>,
    %c5_i32 = arith.constant 5 : i32
    %186 = arith.index_cast %c5_i32 : i32 to index
    %c0_46 = arith.constant 0 : index
    %c0_47 = arith.constant 0 : index
    %187 = vector.load %arg1[%186, %c0_46, %c0_47] : memref<8x8x384xf32, #tpu.memory_space<vmem>>, vector<1x8x384xf32>
    %188 = vector.shape_cast %187 : vector<1x8x384xf32> to vector<8x384xf32>
    %cst_48 = arith.constant dense<0.000000e+00> : vector<8x384xf32>
    %189 = tpu.matmul %181, %3, %cst_48 {dimension_numbers = #tpu.dot_dimension_numbers<[1], [0], [0], [1], [0, 0, 1, 1], [], []>} : vector<8x128xf32>, vector<128x384xf32>, vector<8x384xf32> -> vector<8x384xf32>
    %190 = vector.broadcast %4 : vector<1x384xf32> to vector<8x384xf32>
    %191 = arith.addf %189, %190 : vector<8x384xf32>
    %192 = vector.extract_strided_slice %188 {offsets = [0, 0], sizes = [8, 128], strides = [1, 1]} : vector<8x384xf32> to vector<8x128xf32>
    %193 = vector.extract_strided_slice %191 {offsets = [0, 0], sizes = [8, 128], strides = [1, 1]} : vector<8x384xf32> to vector<8x128xf32>
    %194 = arith.addf %192, %193 : vector<8x128xf32>
    %195 = arith.negf %194 : vector<8x128xf32>
    %196 = math.exp %195 : vector<8x128xf32>
    %cst_49 = arith.constant 1.000000e+00 : f32
    %197 = vector.broadcast %cst_49 : f32 to vector<8x128xf32>
    %198 = arith.addf %197, %196 : vector<8x128xf32>
    %199 = arith.divf %197, %198 : vector<8x128xf32>
    %200 = vector.extract_strided_slice %188 {offsets = [0, 128], sizes = [8, 128], strides = [1, 1]} : vector<8x384xf32> to vector<8x128xf32>
    %201 = vector.extract_strided_slice %191 {offsets = [0, 128], sizes = [8, 128], strides = [1, 1]} : vector<8x384xf32> to vector<8x128xf32>
    %202 = arith.addf %200, %201 : vector<8x128xf32>
    %203 = arith.negf %202 : vector<8x128xf32>
    %204 = math.exp %203 : vector<8x128xf32>
    %cst_50 = arith.constant 1.000000e+00 : f32
    %205 = vector.broadcast %cst_50 : f32 to vector<8x128xf32>
    %206 = arith.addf %205, %204 : vector<8x128xf32>
    %207 = arith.divf %205, %206 : vector<8x128xf32>
    %208 = vector.extract_strided_slice %188 {offsets = [0, 256], sizes = [8, 128], strides = [1, 1]} : vector<8x384xf32> to vector<8x128xf32>
    %209 = vector.extract_strided_slice %191 {offsets = [0, 256], sizes = [8, 128], strides = [1, 1]} : vector<8x384xf32> to vector<8x128xf32>
    %210 = arith.mulf %199, %209 : vector<8x128xf32>
    %211 = arith.addf %208, %210 : vector<8x128xf32>
    %212 = math.tanh %211 : vector<8x128xf32>
    %cst_51 = arith.constant 1.000000e+00 : f32
    %213 = vector.broadcast %cst_51 : f32 to vector<8x128xf32>
    %214 = arith.subf %213, %207 : vector<8x128xf32>
    %215 = arith.mulf %214, %212 : vector<8x128xf32>
    %216 = arith.mulf %207, %181 : vector<8x128xf32>
    %217 = arith.addf %215, %216 : vector<8x128xf32>
    %218 = arith.index_cast %c5_i32 : i32 to index
    %c0_52 = arith.constant 0 : index
    %c0_53 = arith.constant 0 : index
    %219 = vector.load %arg4[%218, %c0_52, %c0_53] : memref<8x8x128xf32, #tpu.memory_space<vmem>>, vector<1x8x128xf32>
    %220 = vector.shape_cast %219 : vector<1x8x128xf32> to vector<8x128xf32>
    %221 = vector.shape_cast %217 : vector<8x128xf32> to vector<1x8x128xf32>
    tpu.vector_store %arg4[%218, %c0_52, %c0_53], %221 {strides = array<i32>} : memref<8x8x128xf32, #tpu.memory_space<vmem>>, vector<1x8x128xf32>,
    %c6_i32 = arith.constant 6 : i32
    %222 = arith.index_cast %c6_i32 : i32 to index
    %c0_54 = arith.constant 0 : index
    %c0_55 = arith.constant 0 : index
    %223 = vector.load %arg1[%222, %c0_54, %c0_55] : memref<8x8x384xf32, #tpu.memory_space<vmem>>, vector<1x8x384xf32>
    %224 = vector.shape_cast %223 : vector<1x8x384xf32> to vector<8x384xf32>
    %cst_56 = arith.constant dense<0.000000e+00> : vector<8x384xf32>
    %225 = tpu.matmul %217, %3, %cst_56 {dimension_numbers = #tpu.dot_dimension_numbers<[1], [0], [0], [1], [0, 0, 1, 1], [], []>} : vector<8x128xf32>, vector<128x384xf32>, vector<8x384xf32> -> vector<8x384xf32>
    %226 = vector.broadcast %4 : vector<1x384xf32> to vector<8x384xf32>
    %227 = arith.addf %225, %226 : vector<8x384xf32>
    %228 = vector.extract_strided_slice %224 {offsets = [0, 0], sizes = [8, 128], strides = [1, 1]} : vector<8x384xf32> to vector<8x128xf32>
    %229 = vector.extract_strided_slice %227 {offsets = [0, 0], sizes = [8, 128], strides = [1, 1]} : vector<8x384xf32> to vector<8x128xf32>
    %230 = arith.addf %228, %229 : vector<8x128xf32>
    %231 = arith.negf %230 : vector<8x128xf32>
    %232 = math.exp %231 : vector<8x128xf32>
    %cst_57 = arith.constant 1.000000e+00 : f32
    %233 = vector.broadcast %cst_57 : f32 to vector<8x128xf32>
    %234 = arith.addf %233, %232 : vector<8x128xf32>
    %235 = arith.divf %233, %234 : vector<8x128xf32>
    %236 = vector.extract_strided_slice %224 {offsets = [0, 128], sizes = [8, 128], strides = [1, 1]} : vector<8x384xf32> to vector<8x128xf32>
    %237 = vector.extract_strided_slice %227 {offsets = [0, 128], sizes = [8, 128], strides = [1, 1]} : vector<8x384xf32> to vector<8x128xf32>
    %238 = arith.addf %236, %237 : vector<8x128xf32>
    %239 = arith.negf %238 : vector<8x128xf32>
    %240 = math.exp %239 : vector<8x128xf32>
    %cst_58 = arith.constant 1.000000e+00 : f32
    %241 = vector.broadcast %cst_58 : f32 to vector<8x128xf32>
    %242 = arith.addf %241, %240 : vector<8x128xf32>
    %243 = arith.divf %241, %242 : vector<8x128xf32>
    %244 = vector.extract_strided_slice %224 {offsets = [0, 256], sizes = [8, 128], strides = [1, 1]} : vector<8x384xf32> to vector<8x128xf32>
    %245 = vector.extract_strided_slice %227 {offsets = [0, 256], sizes = [8, 128], strides = [1, 1]} : vector<8x384xf32> to vector<8x128xf32>
    %246 = arith.mulf %235, %245 : vector<8x128xf32>
    %247 = arith.addf %244, %246 : vector<8x128xf32>
    %248 = math.tanh %247 : vector<8x128xf32>
    %cst_59 = arith.constant 1.000000e+00 : f32
    %249 = vector.broadcast %cst_59 : f32 to vector<8x128xf32>
    %250 = arith.subf %249, %243 : vector<8x128xf32>
    %251 = arith.mulf %250, %248 : vector<8x128xf32>
    %252 = arith.mulf %243, %217 : vector<8x128xf32>
    %253 = arith.addf %251, %252 : vector<8x128xf32>
    %254 = arith.index_cast %c6_i32 : i32 to index
    %c0_60 = arith.constant 0 : index
    %c0_61 = arith.constant 0 : index
    %255 = vector.load %arg4[%254, %c0_60, %c0_61] : memref<8x8x128xf32, #tpu.memory_space<vmem>>, vector<1x8x128xf32>
    %256 = vector.shape_cast %255 : vector<1x8x128xf32> to vector<8x128xf32>
    %257 = vector.shape_cast %253 : vector<8x128xf32> to vector<1x8x128xf32>
    tpu.vector_store %arg4[%254, %c0_60, %c0_61], %257 {strides = array<i32>} : memref<8x8x128xf32, #tpu.memory_space<vmem>>, vector<1x8x128xf32>,
    %c7_i32 = arith.constant 7 : i32
    %258 = arith.index_cast %c7_i32 : i32 to index
    %c0_62 = arith.constant 0 : index
    %c0_63 = arith.constant 0 : index
    %259 = vector.load %arg1[%258, %c0_62, %c0_63] : memref<8x8x384xf32, #tpu.memory_space<vmem>>, vector<1x8x384xf32>
    %260 = vector.shape_cast %259 : vector<1x8x384xf32> to vector<8x384xf32>
    %cst_64 = arith.constant dense<0.000000e+00> : vector<8x384xf32>
    %261 = tpu.matmul %253, %3, %cst_64 {dimension_numbers = #tpu.dot_dimension_numbers<[1], [0], [0], [1], [0, 0, 1, 1], [], []>} : vector<8x128xf32>, vector<128x384xf32>, vector<8x384xf32> -> vector<8x384xf32>
    %262 = vector.broadcast %4 : vector<1x384xf32> to vector<8x384xf32>
    %263 = arith.addf %261, %262 : vector<8x384xf32>
    %264 = vector.extract_strided_slice %260 {offsets = [0, 0], sizes = [8, 128], strides = [1, 1]} : vector<8x384xf32> to vector<8x128xf32>
    %265 = vector.extract_strided_slice %263 {offsets = [0, 0], sizes = [8, 128], strides = [1, 1]} : vector<8x384xf32> to vector<8x128xf32>
    %266 = arith.addf %264, %265 : vector<8x128xf32>
    %267 = arith.negf %266 : vector<8x128xf32>
    %268 = math.exp %267 : vector<8x128xf32>
    %cst_65 = arith.constant 1.000000e+00 : f32
    %269 = vector.broadcast %cst_65 : f32 to vector<8x128xf32>
    %270 = arith.addf %269, %268 : vector<8x128xf32>
    %271 = arith.divf %269, %270 : vector<8x128xf32>
    %272 = vector.extract_strided_slice %260 {offsets = [0, 128], sizes = [8, 128], strides = [1, 1]} : vector<8x384xf32> to vector<8x128xf32>
    %273 = vector.extract_strided_slice %263 {offsets = [0, 128], sizes = [8, 128], strides = [1, 1]} : vector<8x384xf32> to vector<8x128xf32>
    %274 = arith.addf %272, %273 : vector<8x128xf32>
    %275 = arith.negf %274 : vector<8x128xf32>
    %276 = math.exp %275 : vector<8x128xf32>
    %cst_66 = arith.constant 1.000000e+00 : f32
    %277 = vector.broadcast %cst_66 : f32 to vector<8x128xf32>
    %278 = arith.addf %277, %276 : vector<8x128xf32>
    %279 = arith.divf %277, %278 : vector<8x128xf32>
    %280 = vector.extract_strided_slice %260 {offsets = [0, 256], sizes = [8, 128], strides = [1, 1]} : vector<8x384xf32> to vector<8x128xf32>
    %281 = vector.extract_strided_slice %263 {offsets = [0, 256], sizes = [8, 128], strides = [1, 1]} : vector<8x384xf32> to vector<8x128xf32>
    %282 = arith.mulf %271, %281 : vector<8x128xf32>
    %283 = arith.addf %280, %282 : vector<8x128xf32>
    %284 = math.tanh %283 : vector<8x128xf32>
    %cst_67 = arith.constant 1.000000e+00 : f32
    %285 = vector.broadcast %cst_67 : f32 to vector<8x128xf32>
    %286 = arith.subf %285, %279 : vector<8x128xf32>
    %287 = arith.mulf %286, %284 : vector<8x128xf32>
    %288 = arith.mulf %279, %253 : vector<8x128xf32>
    %289 = arith.addf %287, %288 : vector<8x128xf32>
    %290 = arith.index_cast %c7_i32 : i32 to index
    %c0_68 = arith.constant 0 : index
    %c0_69 = arith.constant 0 : index
    %291 = vector.load %arg4[%290, %c0_68, %c0_69] : memref<8x8x128xf32, #tpu.memory_space<vmem>>, vector<1x8x128xf32>
    %292 = vector.shape_cast %291 : vector<1x8x128xf32> to vector<8x128xf32>
    %293 = vector.shape_cast %289 : vector<8x128xf32> to vector<1x8x128xf32>
    tpu.vector_store %arg4[%290, %c0_68, %c0_69], %293 {strides = array<i32>} : memref<8x8x128xf32, #tpu.memory_space<vmem>>, vector<1x8x128xf32>,
    %c8_i32 = arith.constant 8 : i32
    %c0_70 = arith.constant 0 : index
    %c0_71 = arith.constant 0 : index
    %294 = vector.load %arg6[%c0_70, %c0_71] : memref<8x128xf32, #tpu.memory_space<vmem>>, vector<8x128xf32>
    tpu.vector_store %arg6[%c0_70, %c0_71], %289 {strides = array<i32>} : memref<8x128xf32, #tpu.memory_space<vmem>>, vector<8x128xf32>,
    %c0_i32_72 = arith.constant 0 : i32
    %295 = arith.cmpi eq, %arg0, %c0_i32_72 : i32
    %296 = arith.extui %295 : i1 to i32
    %c0_i32_73 = arith.constant 0 : i32
    %297 = arith.cmpi ne, %296, %c0_i32_73 : i32
    scf.if %297 {
      %c0_74 = arith.constant 0 : index
      %c0_75 = arith.constant 0 : index
      %298 = vector.load %arg5[%c0_74, %c0_75] : memref<8x128xf32, #tpu.memory_space<vmem>>, vector<8x128xf32>
      tpu.vector_store %arg5[%c0_74, %c0_75], %289 {strides = array<i32>} : memref<8x128xf32, #tpu.memory_space<vmem>>, vector<8x128xf32>,
    } else {
    }
    return
  }
  func.func @transform_0(%arg0: i32) -> (i32, i32, i32) {
    %c0_i32 = arith.constant 0 : i32
    %c0_i32_0 = arith.constant 0 : i32
    %c0_i32_1 = arith.constant 0 : i32
    return %arg0, %c0_i32, %c0_i32_0 : i32, i32, i32
  }
  func.func @transform_1(%arg0: i32) -> (i32, i32) {
    %c0_i32 = arith.constant 0 : i32
    %c0_i32_0 = arith.constant 0 : i32
    %c0_i32_1 = arith.constant 0 : i32
    return %c0_i32, %c0_i32_0 : i32, i32
  }
  func.func @transform_2(%arg0: i32) -> (i32, i32) {
    %c0_i32 = arith.constant 0 : i32
    %c0_i32_0 = arith.constant 0 : i32
    %c0_i32_1 = arith.constant 0 : i32
    return %c0_i32, %c0_i32_0 : i32, i32
  }
  func.func @transform_3(%arg0: i32) -> (i32, i32, i32) {
    %c0_i32 = arith.constant 0 : i32
    %c0_i32_0 = arith.constant 0 : i32
    %c0_i32_1 = arith.constant 0 : i32
    return %arg0, %c0_i32, %c0_i32_0 : i32, i32, i32
  }
  func.func @transform_4(%arg0: i32) -> (i32, i32) {
    %c0_i32 = arith.constant 0 : i32
    %c0_i32_0 = arith.constant 0 : i32
    %c0_i32_1 = arith.constant 0 : i32
    return %c0_i32, %c0_i32_0 : i32, i32
  }
}

</mosaic_0001>

<bundles_post_ra>
// kernel: tpu_custom_call.1
= control target key start
LH: loop header
LB: loop body
LE: loop exit
PB: predicated region body
PF: predicated region fallthrough
CT: control target
= control target key end

     0   :  { %10 = vsyncpa [#allocation4], 0  ;;  %s3000_s0 = inlined_call_operand.hbm [shape: f32[8,8,384], index: 0, kind: input, shape index: {}]   ;;  %s3001_s1 = inlined_call_operand.hbm [shape: f32[128,384], index: 1, kind: input, shape index: {}]   ;;  %s3002_s2 = inlined_call_operand.vmem [shape: f32[1,384], index: 2, kind: input, shape index: {}]   ;;  %s3003_s3 = inlined_call_operand.hbm [shape: f32[8,8,128], index: 3, kind: output, shape index: {0}]   ;;  %s3004_s4 = inlined_call_operand.hbm [shape: f32[8,128], index: 4, kind: output, shape index: {1}]  }
   0x1   :  { %11 = vsyncpa [#allocation7], 0 }
   0x2   :  { %12 = vsyncpa [#allocation5], 0 }
   0x3   :  { %13 = vsyncpa [#allocation10], 0  ;;  %s2154_s15 = smov [#allocation3]  }
   0x4   :  { %s19_s16 = sshll.u32 %s2154_s15, 4  ;;  %s20_s16 = int_to_ptr.vmem [resolvable:$true] %s19_s16 }
   0x5   :  { %s2074_s17 = scalar_lea.vmem %s20_s16, 3072  ;;  %p2079_p1 = scmp.lt.s32.totalorder %s20_s16, %s20_s16 }
   0x6   :  { %p2075_p0 = scmp.ne.s32.totalorder %s20_s16, %s2074_s17  ;;  %p2080_p2 = scmp.lt.s32.totalorder %s2074_s17, %s2074_s17 }
   0x8   :  { %p2081_p3 = por %p2080_p2, %p2079_p1 }
   0xa   :  { %p2082_p4 = pnand %p2081_p3, %p2075_p0 }
   0xc   :  { %2085 = shalt.err (!%p2082_p4)
}
   0xd   :  { %s2155_s18 = smov 384   ;;  %s2156_s19 = smov 24  }
   0xe   :  { %25 = dma.hbm_to_vmem [thread:$0]  %s3000_s0, 3072, %s20_s16, [#allocation4], %s2155_s18, %s2155_s18, %s2156_s19  }
   0xf   :  { %s2157_s22 = smov [#allocation6]  }
  0x10   :  { %s31_s23 = sshll.u32 %s2157_s22, 4  ;;  %s32_s23 = int_to_ptr.vmem [resolvable:$true] %s31_s23 }
  0x11   :  { %s2094_s24 = scalar_lea.vmem %s32_s23, 6144  ;;  %p2099_p6 = scmp.lt.s32.totalorder %s32_s23, %s32_s23 }
  0x12   :  { %p2095_p5 = scmp.ne.s32.totalorder %s32_s23, %s2094_s24  ;;  %p2100_p7 = scmp.lt.s32.totalorder %s2094_s24, %s2094_s24 }
  0x14   :  { %p2101_p8 = por %p2100_p7, %p2099_p6 }
  0x16   :  { %p2102_p9 = pnand %p2101_p8, %p2095_p5 }
  0x18   :  { %2105 = shalt.err (!%p2102_p9)
}
  0x19   :  { %37 = dma.hbm_to_vmem [thread:$0]  %s3001_s1, 6144, %s32_s23, [#allocation7], %s2155_s18, %s2155_s18, %s2156_s19  }
  0x1a   :  { %2146 = dma.done.wait [#allocation4], 3072  }
  0x1b   :  { %2147 = vsyncadd [#allocation4], 4294964224 }
  0x1c   :  { %2148 = dma.done.wait [#allocation7], 6144  }
  0x1d   :  { %2149 = vsyncadd [#allocation7], 4294961152  ;;  %v3005_v0 = vmov 0.0   ;;  %vm2159_vm0 = vmmov 0   ;;  %v2199_v1 = vld [vmem:[#allocation6 + $0x170] sm:$0xff]  ;;  %v2201_v2 = vld [vmem:[#allocation6 + $0x168] sm:$0xff]  ;;  %v105_v49 = vlaneseq }
  0x1e   :  { %184 = vmatprep.mubr.f32.mxu0 %v3005_v0  ;;  %1648 = vmatprep.subr.mxu1 %v3005_v0  ;;  %3030 = vst [vmem:[#allocation15_spill] sm:$0xff] %v2199_v1  ;;  %v2203_v3 = vld [vmem:[#allocation6 + $0x158] sm:$0xff]  ;;  %v2206_v4 = vld [vmem:[#allocation6 + $0x150] sm:$0xff]  ;;  %v2209_v5 = vld [vmem:[#allocation6 + $0x140] sm:$0xff]  ;;  %s2161_s28 = smov [#allocation9]  }
  0x1f   :  { %1680 = vmatprep.mubr.msk.f32.mxu1 %vm2159_vm0, %v3005_v0  ;;  %120 = vmatprep.subr.mxu0 %v2199_v1  ;;  %v2212_v6 = vld [vmem:[#allocation6 + $0x138] sm:$0xff]  ;;  %v2215_v7 = vld [vmem:[#allocation6 + $0x128] sm:$0xff]  ;;  %v2218_v8 = vld [vmem:[#allocation6 + $0x120] sm:$0xff]  ;;  %v106_v50 = vshrl.u32 %v105_v49, 7  ;;  %s1482_s29 = sshll.u32 %s2161_s28, 4  ;;  %s1483_s29 = int_to_ptr.vmem [resolvable:$true] %s1482_s29 }
  0x20   :  { %121 = vmatpush1.msra.mxu0 %v2201_v2  ;;  %v2221_v9 = vld [vmem:[#allocation6 + $0x110] sm:$0xff]  ;;  %v2224_v10 = vld [vmem:[#allocation6 + $0x108] sm:$0xff]  ;;  %v2227_v11 = vld [vmem:[#allocation6 + $0xf8] sm:$0xff] }
  0x21   :  { %122 = vmatprep.subr.mxu0 %v2203_v3  ;;  %v2230_v12 = vld [vmem:[#allocation6 + $0xf0] sm:$0xff]  ;;  %v2233_v13 = vld [vmem:[#allocation6 + $0xe0] sm:$0xff]  ;;  %v2235_v14 = vld [vmem:[#allocation6 + $0x178] sm:$0xff]  ;;  %v107_v51 = vsub.s32 0, %v106_v50  ;;  %v111_v54 = vsub.s32 1, %v106_v50 }
  0x22   :  { %123 = vmatpush1.msra.mxu0 %v2206_v4  ;;  %v2238_v15 = vld [vmem:[#allocation6 + $0xd8] sm:$0xff]  ;;  %1649 = vmatpush3.msra.mxu1 %v2235_v14  ;;  %v2241_v16 = vld [vmem:[#allocation6 + $0x160] sm:$0xff]  ;;  %v2244_v17 = vld [vmem:[#allocation6 + $0xc8] sm:$0xff] }
  0x23   :  { %124 = vmatprep.subr.mxu0 %v2209_v5  ;;  %1650 = vmatprep.subr.mxu1 %v3005_v0  ;;  %v2247_v18 = vld [vmem:[#allocation6 + $0x148] sm:$0xff]  ;;  %v2250_v19 = vld [vmem:[#allocation6 + $0xc0] sm:$0xff]  ;;  %v2254_v20 = vld [vmem:[#allocation6 + $0xb0] sm:$0xff] }
  0x24   :  { %125 = vmatpush1.msra.mxu0 %v2212_v6  ;;  %1651 = vmatpush3.msra.mxu1 %v2241_v16  ;;  %v2257_v21 = vld [vmem:[#allocation6 + $0x130] sm:$0xff]  ;;  %v2260_v22 = vld [vmem:[#allocation6 + $0xa8] sm:$0xff]  ;;  %v2264_v23 = vld [vmem:[#allocation6 + $0x98] sm:$0xff] }
  0x25   :  { %126 = vmatprep.subr.mxu0 %v2215_v7  ;;  %1652 = vmatprep.subr.mxu1 %v3005_v0  ;;  %v2267_v24 = vld [vmem:[#allocation6 + $0x118] sm:$0xff]  ;;  %v2270_v25 = vld [vmem:[#allocation6 + $0x90] sm:$0xff]  ;;  %v2274_v26 = vld [vmem:[#allocation6 + $0x80] sm:$0xff] }
  0x26   :  { %127 = vmatpush1.msra.mxu0 %v2218_v8  ;;  %1653 = vmatpush3.msra.mxu1 %v2247_v18  ;;  %v2277_v27 = vld [vmem:[#allocation6 + $0x100] sm:$0xff]  ;;  %v2280_v28 = vld [vmem:[#allocation6 + $0x78] sm:$0xff]  ;;  %v2284_v29 = vld [vmem:[#allocation6 + $0x68] sm:$0xff] }
  0x27   :  { %128 = vmatprep.subr.mxu0 %v2221_v9  ;;  %1654 = vmatprep.subr.mxu1 %v3005_v0  ;;  %v2287_v30 = vld [vmem:[#allocation6 + $0xe8] sm:$0xff]  ;;  %v2290_v31 = vld [vmem:[#allocation6 + $0x60] sm:$0xff]  ;;  %v2294_v32 = vld [vmem:[#allocation6 + $0x50] sm:$0xff] }
  0x28   :  { %129 = vmatpush1.msra.mxu0 %v2224_v10  ;;  %1655 = vmatpush3.msra.mxu1 %v2257_v21  ;;  %v2297_v33 = vld [vmem:[#allocation6 + $0xd0] sm:$0xff]  ;;  %v2300_v34 = vld [vmem:[#allocation6 + $0x48] sm:$0xff]  ;;  %v2304_v35 = vld [vmem:[#allocation6 + $0x38] sm:$0xff] }
  0x29   :  { %130 = vmatprep.subr.mxu0 %v2227_v11  ;;  %1656 = vmatprep.subr.mxu1 %v3005_v0  ;;  %v2307_v36 = vld [vmem:[#allocation6 + $0xb8] sm:$0xff]  ;;  %v2310_v37 = vld [vmem:[#allocation6 + $0x30] sm:$0xff]  ;;  %v2314_v38 = vld [vmem:[#allocation6 + $0x20] sm:$0xff] }
  0x2a   :  { %131 = vmatpush1.msra.mxu0 %v2230_v12  ;;  %1657 = vmatpush3.msra.mxu1 %v2267_v24  ;;  %3031 = vst [vmem:[#allocation16_spill] sm:$0xff] %v2314_v38  ;;  %v2317_v39 = vld [vmem:[#allocation6 + $0xa0] sm:$0xff]  ;;  %v2320_v40 = vld [vmem:[#allocation6 + $0x18] sm:$0xff]  ;;  %v2324_v41 = vld [vmem:[#allocation6 + $0x8] sm:$0xff] }
  0x2b   :  { %132 = vmatprep.subr.mxu0 %v2233_v13  ;;  %1658 = vmatprep.subr.mxu1 %v3005_v0  ;;  %3032 = vst [vmem:[#allocation17_spill] sm:$0xff] %v2320_v40  ;;  %3033 = vst [vmem:[#allocation18_spill] sm:$0xff] %v2324_v41  ;;  %v2327_v42 = vld [vmem:[#allocation6 + $0x88] sm:$0xff]  ;;  %v2330_v43 = vld [vmem:[#allocation6] sm:$0xff] }
  0x2c   :  { %133 = vmatpush1.msra.mxu0 %v2238_v15  ;;  %1659 = vmatpush3.msra.mxu1 %v2277_v27  ;;  %3034 = vst [vmem:[#allocation19_spill] sm:$0xff] %v2330_v43  ;;  %v2335_v44 = vld [vmem:[#allocation6 + $0x70] sm:$0xff]  ;;  %v2341_v45 = vld [vmem:[#allocation6 + $0x58] sm:$0xff]  ;;  %v2346_v46 = vld [vmem:[#allocation6 + $0x40] sm:$0xff] }
  0x2d   :  { %134 = vmatprep.subr.mxu0 %v2244_v17  ;;  %1660 = vmatprep.subr.mxu1 %v3005_v0  ;;  %v2352_v47 = vld [vmem:[#allocation6 + $0x28] sm:$0xff]  ;;  %v2358_v48 = vld [vmem:[#allocation6 + $0x10] sm:$0xff]  ;;  %v99_v52 = vld [vmem:[%s3002_s2] sm:$0x7]  ;;  %s2160_s2 = smov [#allocation8]  }
  0x2e   :  { %135 = vmatpush1.msra.mxu0 %v2250_v19  ;;  %1661 = vmatpush3.msra.mxu1 %v2287_v30  ;;  %3035 = vst [vmem:[#allocation20_spill] sm:$0xff] %v2352_v47  ;;  %3036 = vst [vmem:[#allocation21_spill] sm:$0xff] %v2358_v48  ;;  %v2432_v53 = vrot.slane %v99_v52, %v107_v51  ;;  %v101_v55 = vld [vmem:[#allocation3] sm:$0xff]  ;;  %v2435_v58 = vrot.slane %v99_v52, %v111_v54  ;;  %v102_v63 = vld [vmem:[#allocation3 + $0x8] sm:$0xff]  ;;  %s1469_s27 = sshll.u32 %s2160_s2, 4  ;;  %s1470_s27 = int_to_ptr.vmem [resolvable:$true] %s1469_s27 }
  0x2f   :  { %136 = vmatprep.subr.mxu0 %v2254_v20  ;;  %1662 = vmatprep.subr.mxu1 %v3005_v0  ;;  %s2106_s30 = scalar_lea.vmem %s1470_s27, 1024  ;;  %p2111_p11 = scmp.lt.s32.totalorder %s1470_s27, %s1470_s27 }
  0x30   :  { %137 = vmatpush1.msra.mxu0 %v2260_v22  ;;  %1663 = vmatpush3.msra.mxu1 %v2297_v33  ;;  %3037 = vst [vmem:[#allocation22_spill] sm:$0xff] %v2432_v53  ;;  %p2107_p10 = scmp.ne.s32.totalorder %s1470_s27, %s2106_s30  ;;  %p2112_p12 = scmp.lt.s32.totalorder %s2106_s30, %s2106_s30 }
  0x31   :  { %138 = vmatprep.subr.mxu0 %v2264_v23  ;;  %1664 = vmatprep.subr.mxu1 %v3005_v0 }
  0x32   :  { %139 = vmatpush1.msra.mxu0 %v2270_v25  ;;  %1665 = vmatpush3.msra.mxu1 %v2307_v36  ;;  %p2113_p13 = por %p2112_p12, %p2111_p11 }
  0x33   :  { %140 = vmatprep.subr.mxu0 %v2274_v26  ;;  %1666 = vmatprep.subr.mxu1 %v3005_v0 }
  0x34   :  { %141 = vmatpush1.msra.mxu0 %v2280_v28  ;;  %1667 = vmatpush3.msra.mxu1 %v2317_v39  ;;  %p2114_p0 = pnand %p2113_p13, %p2107_p10 }
  0x35   :  { %142 = vmatprep.subr.mxu0 %v2284_v29  ;;  %1668 = vmatprep.subr.mxu1 %v3005_v0 }
  0x36   :  { %143 = vmatpush1.msra.mxu0 %v2290_v31  ;;  %1669 = vmatpush3.msra.mxu1 %v2327_v42 }
  0x37   :  { %144 = vmatprep.subr.mxu0 %v2294_v32  ;;  %1670 = vmatprep.subr.mxu1 %v3005_v0 }
  0x38   :  { %145 = vmatpush1.msra.mxu0 %v2300_v34  ;;  %1671 = vmatpush3.msra.mxu1 %v2335_v44 }
  0x39   :  { %146 = vmatprep.subr.mxu0 %v2304_v35  ;;  %1672 = vmatprep.subr.mxu1 %v3005_v0 }
  0x3a   :  { %147 = vmatpush1.msra.mxu0 %v2310_v37  ;;  %1673 = vmatpush3.msra.mxu1 %v2341_v45 }
  0x3b   :  { %148 = vmatprep.subr.mxu0 %v2314_v38  ;;  %1674 = vmatprep.subr.mxu1 %v3005_v0 }
  0x3c   :  { %149 = vmatpush1.msra.mxu0 %v2320_v40  ;;  %1675 = vmatpush3.msra.mxu1 %v2346_v46 }
  0x3d   :  { %150 = vmatprep.subr.mxu0 %v2324_v41  ;;  %1676 = vmatprep.subr.mxu1 %v3005_v0 }
  0x3e   :  { %151 = vmatpush1.msra.mxu0 %v2330_v43  ;;  %1677 = vmatpush3.msra.mxu1 %v2352_v47 }
  0x3f   :  { %185 = vmatmul.mubr.f32.vlgmr.msra.gmra.mxu0 %v3005_v0  ;;  %287 = vmatprep.subr.mxu0 %v2199_v1 }
  0x40   :  { %288 = vmatpush1.msra.mxu0 %v2201_v2  ;;  %1678 = vmatprep.subr.mxu1 %v3005_v0 }
  0x41   :  { %289 = vmatprep.subr.mxu0 %v2203_v3  ;;  %1679 = vmatpush3.msra.mxu1 %v2358_v48 }
  0x42   :  { %290 = vmatpush1.msra.mxu0 %v2206_v4  ;;  %1681 = vmatmul.mubr.f32.vlgmr.msra.gmra.mxu1 %v3005_v0 }
  0x43   :  { %291 = vmatprep.subr.mxu0 %v2209_v5  ;;  %1683 = vmatprep.subr.mxu1 %v3005_v0 }
  0x44   :  { %292 = vmatpush1.msra.mxu0 %v2212_v6  ;;  %1684 = vmatpush3.msra.mxu1 %v2235_v14 }
  0x45   :  { %293 = vmatprep.subr.mxu0 %v2215_v7  ;;  %1685 = vmatprep.subr.mxu1 %v3005_v0 }
  0x46   :  { %294 = vmatpush1.msra.mxu0 %v2218_v8  ;;  %1686 = vmatpush3.msra.mxu1 %v2241_v16 }
  0x47   :  { %295 = vmatprep.subr.mxu0 %v2221_v9  ;;  %1687 = vmatprep.subr.mxu1 %v3005_v0 }
  0x48   :  { %296 = vmatpush1.msra.mxu0 %v2224_v10  ;;  %1688 = vmatpush3.msra.mxu1 %v2247_v18 }
  0x49   :  { %297 = vmatprep.subr.mxu0 %v2227_v11  ;;  %1689 = vmatprep.subr.mxu1 %v3005_v0 }
  0x4a   :  { %298 = vmatpush1.msra.mxu0 %v2230_v12  ;;  %1690 = vmatpush3.msra.mxu1 %v2257_v21 }
  0x4b   :  { %299 = vmatprep.subr.mxu0 %v2233_v13  ;;  %1691 = vmatprep.subr.mxu1 %v3005_v0 }
  0x4c   :  { %300 = vmatpush1.msra.mxu0 %v2238_v15  ;;  %1692 = vmatpush3.msra.mxu1 %v2267_v24 }
  0x4d   :  { %301 = vmatprep.subr.mxu0 %v2244_v17  ;;  %1693 = vmatprep.subr.mxu1 %v3005_v0 }
  0x4e   :  { %302 = vmatpush1.msra.mxu0 %v2250_v19  ;;  %1694 = vmatpush3.msra.mxu1 %v2277_v27 }
  0x4f   :  { %303 = vmatprep.subr.mxu0 %v2254_v20  ;;  %1695 = vmatprep.subr.mxu1 %v3005_v0 }
  0x50   :  { %304 = vmatpush1.msra.mxu0 %v2260_v22  ;;  %1696 = vmatpush3.msra.mxu1 %v2287_v30 }
  0x51   :  { %305 = vmatprep.subr.mxu0 %v2264_v23  ;;  %1697 = vmatprep.subr.mxu1 %v3005_v0 }
  0x52   :  { %306 = vmatpush1.msra.mxu0 %v2270_v25  ;;  %1698 = vmatpush3.msra.mxu1 %v2297_v33 }
  0x53   :  { %307 = vmatprep.subr.mxu0 %v2274_v26  ;;  %1699 = vmatprep.subr.mxu1 %v3005_v0 }
  0x54   :  { %308 = vmatpush1.msra.mxu0 %v2280_v28  ;;  %1700 = vmatpush3.msra.mxu1 %v2307_v36 }
  0x55   :  { %309 = vmatprep.subr.mxu0 %v2284_v29  ;;  %1701 = vmatprep.subr.mxu1 %v3005_v0 }
  0x56   :  { %310 = vmatpush1.msra.mxu0 %v2290_v31  ;;  %1702 = vmatpush3.msra.mxu1 %v2317_v39 }
  0x57   :  { %311 = vmatprep.subr.mxu0 %v2294_v32  ;;  %1703 = vmatprep.subr.mxu1 %v3005_v0 }
  0x58   :  { %312 = vmatpush1.msra.mxu0 %v2300_v34  ;;  %1704 = vmatpush3.msra.mxu1 %v2327_v42 }
  0x59   :  { %313 = vmatprep.subr.mxu0 %v2304_v35  ;;  %1705 = vmatprep.subr.mxu1 %v3005_v0 }
  0x5a   :  { %314 = vmatpush1.msra.mxu0 %v2310_v37  ;;  %1706 = vmatpush3.msra.mxu1 %v2335_v44 }
  0x5b   :  { %315 = vmatprep.subr.mxu0 %v2314_v38  ;;  %1707 = vmatprep.subr.mxu1 %v3005_v0 }
  0x5c   :  { %316 = vmatpush1.msra.mxu0 %v2320_v40  ;;  %1708 = vmatpush3.msra.mxu1 %v2341_v45 }
  0x5d   :  { %317 = vmatprep.subr.mxu0 %v2324_v41  ;;  %351 = vmatprep.mubr.f32.mxu0 %v3005_v0  ;;  %v115_v41 = vsub.s32 2, %v106_v50  ;;  %v3041_v50 = vld [vmem:[#allocation19_spill] sm:$0xff] }
  0x5e   :  { %318 = vmatpush1.msra.mxu0 %v2330_v43  ;;  %1709 = vmatprep.subr.mxu1 %v3005_v0 }
  0x5f   :  { %1715 = vmatprep.mubr.msk.f32.mxu1 %vm2159_vm0, %v3005_v0  ;;  %1710 = vmatpush3.msra.mxu1 %v2346_v46 }
  0x60   :  { %455 = vmatprep.subr.mxu0 %v2199_v1  ;;  %1711 = vmatprep.subr.mxu1 %v3005_v0 }
  0x61   :  { %1712 = vmatpush3.msra.mxu1 %v2352_v47  ;;  %v2438_v47 = vrot.slane %v99_v52, %v115_v41  ;;  %v3039_v41 = vld [vmem:[#allocation20_spill] sm:$0xff]  ;;  %v3042_v52 = vld [vmem:[#allocation21_spill] sm:$0xff] }
  0x62   :  { %1713 = vmatprep.subr.mxu1 %v3005_v0 }
  0x63   :  { %1714 = vmatpush3.msra.mxu1 %v2358_v48 }
  0x64   :  { %1718 = vmatprep.subr.mxu1 %v3005_v0 }
  0xff   :  { %v186_v56 = vpop.f32.mrf.mxu0 }
 0x100   :  { %v187_v57 = vadd.f32 %v186_v56, %v2432_v53 }
 0x101   :  { %v188_v59 = vpop.f32.mrf.mxu0 }
 0x102   :  { %v261_v60 = vadd.f32 %v187_v57, %v101_v55  ;;  %v189_v62 = vadd.f32 %v188_v59, %v2435_v58  ;;  %v257_v0 = vpop.f32.mrf.mxu1 }
 0x103   :  { %v258_v55 = vadd.f32 %v257_v0, %v2438_v47  ;;  %v3038_v0 = vmov 0.0  }
 0x104   :  { %v1496_v61 = vmul.f32 -1.442695, %v261_v60  ;;  %v268_v49 = vadd.f32 %v189_v62, %v102_v63  ;;  %v1682_v1 = vpop.f32.mrf.mxu1  ;;  %v103_v60 = vld [vmem:[#allocation3 + $0x10] sm:$0xff] }
 0x106   :  { %1938 = vpow2.f32 %v1496_v61  ;;  %v1497_v48 = vmul.f32 -1.442695, %v268_v49 }
 0x108   :  { %1940 = vpow2.f32 %v1497_v48 }
 0x113   :  { %v1939_v51 = vpop.eup %1938 }
 0x114   :  { %v265_v43 = vadd.f32 1.0, %v1939_v51 }
 0x115   :  { %v1941_v54 = vpop.eup %1940 }
 0x116   :  { %1942 = vrcp.f32 %v265_v43  ;;  %v272_v56 = vadd.f32 1.0, %v1941_v54  ;;  %v3040_v43 = vld [vmem:[#allocation18_spill] sm:$0xff]  ;;  %v3043_v54 = vld [vmem:[#allocation15_spill] sm:$0xff] }
 0x118   :  { %1944 = vrcp.f32 %v272_v56  ;;  %v284_v56 = vld [vmem:[#allocation3 + $0x18] sm:$0xff] }
 0x123   :  { %v1943_v57 = vpop.eup %1942 }
 0x124   :  { %v275_v59 = vmul.f32 %v1943_v57, %v258_v55 }
 0x125   :  { %v1945_v62 = vpop.eup %1944 }
 0x126   :  { %v276_v61 = vadd.f32 %v275_v59, %v103_v60  ;;  %v278_v1 = vsub.f32 1.0, %v1945_v62  ;;  %v280_v49 = vmul.f32 0.0, %v1945_v62 }
 0x128   :  { %1946 = vtanh.f32 %v276_v61 }
 0x135   :  { %v1947_v63 = vpop.eup %1946 }
 0x136   :  { %v279_v48 = vmul.f32 %v1947_v63, %v278_v1 }
 0x138   :  { %v2441_v51 = vadd.f32 %v280_v49, %v279_v48  ;;  %v285_v48 = vld [vmem:[#allocation3 + $0x20] sm:$0xff] }
 0x13a   :  { %282 = vst [vmem:[#allocation8] sm:$0xff] %v2441_v51  ;;  %352 = vmatmul.mubr.f32.vlgmr.msra.gmra.mxu0 %v2441_v51  ;;  %1716 = vmatmul.mubr.f32.vlgmr.msra.gmra.mxu1 %v2441_v51 }
 0x13b   :  { %456 = vmatpush1.msra.mxu0 %v2201_v2  ;;  %1719 = vmatpush3.msra.mxu1 %v2235_v14 }
 0x13c   :  { %457 = vmatprep.subr.mxu0 %v2203_v3  ;;  %1720 = vmatprep.subr.mxu1 %v3038_v0 }
 0x13d   :  { %458 = vmatpush1.msra.mxu0 %v2206_v4  ;;  %1721 = vmatpush3.msra.mxu1 %v2241_v16 }
 0x13e   :  { %459 = vmatprep.subr.mxu0 %v2209_v5  ;;  %1722 = vmatprep.subr.mxu1 %v3038_v0 }
 0x13f   :  { %460 = vmatpush1.msra.mxu0 %v2212_v6  ;;  %1723 = vmatpush3.msra.mxu1 %v2247_v18 }
 0x140   :  { %461 = vmatprep.subr.mxu0 %v2215_v7  ;;  %1724 = vmatprep.subr.mxu1 %v3038_v0 }
 0x141   :  { %462 = vmatpush1.msra.mxu0 %v2218_v8  ;;  %1725 = vmatpush3.msra.mxu1 %v2257_v21 }
 0x142   :  { %463 = vmatprep.subr.mxu0 %v2221_v9  ;;  %1726 = vmatprep.subr.mxu1 %v3038_v0 }
 0x143   :  { %464 = vmatpush1.msra.mxu0 %v2224_v10  ;;  %1727 = vmatpush3.msra.mxu1 %v2267_v24 }
 0x144   :  { %465 = vmatprep.subr.mxu0 %v2227_v11  ;;  %1728 = vmatprep.subr.mxu1 %v3038_v0 }
 0x145   :  { %466 = vmatpush1.msra.mxu0 %v2230_v12  ;;  %1729 = vmatpush3.msra.mxu1 %v2277_v27 }
 0x146   :  { %467 = vmatprep.subr.mxu0 %v2233_v13  ;;  %1730 = vmatprep.subr.mxu1 %v3038_v0 }
 0x147   :  { %468 = vmatpush1.msra.mxu0 %v2238_v15  ;;  %1731 = vmatpush3.msra.mxu1 %v2287_v30 }
 0x148   :  { %469 = vmatprep.subr.mxu0 %v2244_v17  ;;  %1732 = vmatprep.subr.mxu1 %v3038_v0 }
 0x149   :  { %470 = vmatpush1.msra.mxu0 %v2250_v19  ;;  %1733 = vmatpush3.msra.mxu1 %v2297_v33 }
 0x14a   :  { %471 = vmatprep.subr.mxu0 %v2254_v20  ;;  %1734 = vmatprep.subr.mxu1 %v3038_v0 }
 0x14b   :  { %472 = vmatpush1.msra.mxu0 %v2260_v22  ;;  %1735 = vmatpush3.msra.mxu1 %v2307_v36 }
 0x14c   :  { %473 = vmatprep.subr.mxu0 %v2264_v23  ;;  %1736 = vmatprep.subr.mxu1 %v3038_v0 }
 0x14d   :  { %474 = vmatpush1.msra.mxu0 %v2270_v25  ;;  %1737 = vmatpush3.msra.mxu1 %v2317_v39 }
 0x14e   :  { %475 = vmatprep.subr.mxu0 %v2274_v26  ;;  %1738 = vmatprep.subr.mxu1 %v3038_v0 }
 0x14f   :  { %476 = vmatpush1.msra.mxu0 %v2280_v28  ;;  %1739 = vmatpush3.msra.mxu1 %v2327_v42 }
 0x150   :  { %477 = vmatprep.subr.mxu0 %v2284_v29  ;;  %1740 = vmatprep.subr.mxu1 %v3038_v0 }
 0x151   :  { %478 = vmatpush1.msra.mxu0 %v2290_v31  ;;  %1741 = vmatpush3.msra.mxu1 %v2335_v44 }
 0x152   :  { %479 = vmatprep.subr.mxu0 %v2294_v32  ;;  %1742 = vmatprep.subr.mxu1 %v3038_v0 }
 0x153   :  { %480 = vmatpush1.msra.mxu0 %v2300_v34  ;;  %1743 = vmatpush3.msra.mxu1 %v2341_v45 }
 0x154   :  { %481 = vmatprep.subr.mxu0 %v2304_v35  ;;  %1744 = vmatprep.subr.mxu1 %v3038_v0 }
 0x155   :  { %482 = vmatpush1.msra.mxu0 %v2310_v37  ;;  %1745 = vmatpush3.msra.mxu1 %v2346_v46 }
 0x156   :  { %483 = vmatprep.subr.mxu0 %v2314_v38  ;;  %1746 = vmatprep.subr.mxu1 %v3038_v0 }
 0x157   :  { %484 = vmatpush1.msra.mxu0 %v2320_v40  ;;  %1747 = vmatpush3.msra.mxu1 %v3039_v41 }
 0x158   :  { %485 = vmatprep.subr.mxu0 %v3040_v43  ;;  %1748 = vmatprep.subr.mxu1 %v3038_v0 }
 0x159   :  { %486 = vmatpush1.msra.mxu0 %v3041_v50  ;;  %519 = vmatprep.mubr.f32.mxu0 %v3038_v0 }
 0x15a   :  { %1749 = vmatpush3.msra.mxu1 %v3042_v52  ;;  %1750 = vmatprep.mubr.msk.f32.mxu1 %vm2159_vm0, %v3038_v0 }
 0x15b   :  { %623 = vmatprep.subr.mxu0 %v3043_v54  ;;  %1753 = vmatprep.subr.mxu1 %v3038_v0 }
 0x1fa   :  { %v353_v55 = vpop.f32.mrf.mxu0  ;;  %v424_v57 = vpop.f32.mrf.mxu1 }
 0x1fb   :  { %v354_v60 = vadd.f32 %v353_v55, %v2432_v53  ;;  %v425_v40 = vadd.f32 %v424_v57, %v2438_v47  ;;  %v286_v55 = vld [vmem:[#allocation3 + $0x28] sm:$0xff] }
 0x1fc   :  { %v355_v59 = vpop.f32.mrf.mxu0  ;;  %v1717_v61 = vpop.f32.mrf.mxu1 }
 0x1fd   :  { %v428_v62 = vadd.f32 %v354_v60, %v284_v56  ;;  %v356_v63 = vadd.f32 %v355_v59, %v2435_v58 }
 0x1ff   :  { %v1498_v1 = vmul.f32 -1.442695, %v428_v62  ;;  %v435_v49 = vadd.f32 %v356_v63, %v285_v48  ;;  %v3051_v48 = vld [vmem:[#allocation22_spill] sm:$0xff] }
 0x201   :  { %1948 = vpow2.f32 %v1498_v1  ;;  %v1499_v52 = vmul.f32 -1.442695, %v435_v49 }
 0x203   :  { %1950 = vpow2.f32 %v1499_v52 }
 0x20e   :  { %v1949_v50 = vpop.eup %1948 }
 0x20f   :  { %v432_v54 = vadd.f32 1.0, %v1949_v50  ;;  %v3050_v50 = vld [vmem:[#allocation15_spill] sm:$0xff] }
 0x210   :  { %v1951_v43 = vpop.eup %1950 }
 0x211   :  { %1952 = vrcp.f32 %v432_v54  ;;  %v439_v41 = vadd.f32 1.0, %v1951_v43  ;;  %v3049_v43 = vld [vmem:[#allocation21_spill] sm:$0xff]  ;;  %v452_v54 = vld [vmem:[#allocation3 + $0x30] sm:$0xff] }
 0x213   :  { %1954 = vrcp.f32 %v439_v41  ;;  %v3048_v41 = vld [vmem:[#allocation19_spill] sm:$0xff] }
 0x21e   :  { %v1953_v38 = vpop.eup %1952 }
 0x21f   :  { %v442_v53 = vmul.f32 %v1953_v38, %v425_v40  ;;  %v3044_v38 = vld [vmem:[#allocation16_spill] sm:$0xff]  ;;  %v3045_v40 = vld [vmem:[#allocation17_spill] sm:$0xff] }
 0x220   :  { %v1955_v60 = vpop.eup %1954 }
 0x221   :  { %v443_v56 = vadd.f32 %v442_v53, %v286_v55  ;;  %v445_v59 = vsub.f32 1.0, %v1955_v60  ;;  %v447_v1 = vmul.f32 %v1955_v60, %v2441_v51  ;;  %v3046_v53 = vld [vmem:[#allocation20_spill] sm:$0xff]  ;;  %v3047_v51 = vld [vmem:[#allocation18_spill] sm:$0xff] }
 0x223   :  { %1956 = vtanh.f32 %v443_v56 }
 0x230   :  { %v1957_v61 = vpop.eup %1956 }
 0x231   :  { %v446_v62 = vmul.f32 %v1957_v61, %v445_v59 }
 0x233   :  { %v2517_v52 = vadd.f32 %v447_v1, %v446_v62  ;;  %v453_v62 = vld [vmem:[#allocation3 + $0x38] sm:$0xff] }
 0x235   :  { %450 = vst [vmem:[#allocation8 + $0x8] sm:$0xff] %v2517_v52  ;;  %520 = vmatmul.mubr.f32.vlgmr.msra.gmra.mxu0 %v2517_v52  ;;  %1751 = vmatmul.mubr.f32.vlgmr.msra.gmra.mxu1 %v2517_v52 }
 0x236   :  { %624 = vmatpush1.msra.mxu0 %v2201_v2  ;;  %1754 = vmatpush3.msra.mxu1 %v2235_v14 }
 0x237   :  { %625 = vmatprep.subr.mxu0 %v2203_v3  ;;  %1755 = vmatprep.subr.mxu1 %v3038_v0 }
 0x238   :  { %626 = vmatpush1.msra.mxu0 %v2206_v4  ;;  %1756 = vmatpush3.msra.mxu1 %v2241_v16 }
 0x239   :  { %627 = vmatprep.subr.mxu0 %v2209_v5  ;;  %1757 = vmatprep.subr.mxu1 %v3038_v0 }
 0x23a   :  { %628 = vmatpush1.msra.mxu0 %v2212_v6  ;;  %1758 = vmatpush3.msra.mxu1 %v2247_v18 }
 0x23b   :  { %629 = vmatprep.subr.mxu0 %v2215_v7  ;;  %1759 = vmatprep.subr.mxu1 %v3038_v0 }
 0x23c   :  { %630 = vmatpush1.msra.mxu0 %v2218_v8  ;;  %1760 = vmatpush3.msra.mxu1 %v2257_v21 }
 0x23d   :  { %631 = vmatprep.subr.mxu0 %v2221_v9  ;;  %1761 = vmatprep.subr.mxu1 %v3038_v0 }
 0x23e   :  { %632 = vmatpush1.msra.mxu0 %v2224_v10  ;;  %1762 = vmatpush3.msra.mxu1 %v2267_v24 }
 0x23f   :  { %633 = vmatprep.subr.mxu0 %v2227_v11  ;;  %1763 = vmatprep.subr.mxu1 %v3038_v0 }
 0x240   :  { %634 = vmatpush1.msra.mxu0 %v2230_v12  ;;  %1764 = vmatpush3.msra.mxu1 %v2277_v27 }
 0x241   :  { %635 = vmatprep.subr.mxu0 %v2233_v13  ;;  %1765 = vmatprep.subr.mxu1 %v3038_v0 }
 0x242   :  { %636 = vmatpush1.msra.mxu0 %v2238_v15  ;;  %1766 = vmatpush3.msra.mxu1 %v2287_v30 }
 0x243   :  { %637 = vmatprep.subr.mxu0 %v2244_v17  ;;  %1767 = vmatprep.subr.mxu1 %v3038_v0 }
 0x244   :  { %638 = vmatpush1.msra.mxu0 %v2250_v19  ;;  %1768 = vmatpush3.msra.mxu1 %v2297_v33 }
 0x245   :  { %639 = vmatprep.subr.mxu0 %v2254_v20  ;;  %1769 = vmatprep.subr.mxu1 %v3038_v0 }
 0x246   :  { %640 = vmatpush1.msra.mxu0 %v2260_v22  ;;  %1770 = vmatpush3.msra.mxu1 %v2307_v36 }
 0x247   :  { %641 = vmatprep.subr.mxu0 %v2264_v23  ;;  %1771 = vmatprep.subr.mxu1 %v3038_v0 }
 0x248   :  { %642 = vmatpush1.msra.mxu0 %v2270_v25  ;;  %1772 = vmatpush3.msra.mxu1 %v2317_v39 }
 0x249   :  { %643 = vmatprep.subr.mxu0 %v2274_v26  ;;  %1773 = vmatprep.subr.mxu1 %v3038_v0 }
 0x24a   :  { %644 = vmatpush1.msra.mxu0 %v2280_v28  ;;  %1774 = vmatpush3.msra.mxu1 %v2327_v42 }
 0x24b   :  { %645 = vmatprep.subr.mxu0 %v2284_v29  ;;  %1775 = vmatprep.subr.mxu1 %v3038_v0 }
 0x24c   :  { %646 = vmatpush1.msra.mxu0 %v2290_v31  ;;  %1776 = vmatpush3.msra.mxu1 %v2335_v44 }
 0x24d   :  { %647 = vmatprep.subr.mxu0 %v2294_v32  ;;  %1777 = vmatprep.subr.mxu1 %v3038_v0 }
 0x24e   :  { %648 = vmatpush1.msra.mxu0 %v2300_v34  ;;  %1778 = vmatpush3.msra.mxu1 %v2341_v45 }
 0x24f   :  { %649 = vmatprep.subr.mxu0 %v2304_v35  ;;  %1779 = vmatprep.subr.mxu1 %v3038_v0 }
 0x250   :  { %650 = vmatpush1.msra.mxu0 %v2310_v37  ;;  %1780 = vmatpush3.msra.mxu1 %v2346_v46 }
 0x251   :  { %651 = vmatprep.subr.mxu0 %v3044_v38  ;;  %1781 = vmatprep.subr.mxu1 %v3038_v0 }
 0x252   :  { %652 = vmatpush1.msra.mxu0 %v3045_v40  ;;  %1782 = vmatpush3.msra.mxu1 %v3046_v53 }
 0x253   :  { %653 = vmatprep.subr.mxu0 %v3047_v51  ;;  %1783 = vmatprep.subr.mxu1 %v3038_v0 }
 0x254   :  { %654 = vmatpush1.msra.mxu0 %v3048_v41  ;;  %687 = vmatprep.mubr.f32.mxu0 %v3038_v0 }
 0x255   :  { %1784 = vmatpush3.msra.mxu1 %v3049_v43  ;;  %1785 = vmatprep.mubr.msk.f32.mxu1 %vm2159_vm0, %v3038_v0 }
 0x256   :  { %791 = vmatprep.subr.mxu0 %v3050_v50  ;;  %1788 = vmatprep.subr.mxu1 %v3038_v0 }
 0x2f5   :  { %v521_v57 = vpop.f32.mrf.mxu0  ;;  %v592_v63 = vpop.f32.mrf.mxu1 }
 0x2f6   :  { %v522_v49 = vadd.f32 %v521_v57, %v3051_v48  ;;  %v593_v40 = vadd.f32 %v592_v63, %v2438_v47  ;;  %v454_v57 = vld [vmem:[#allocation3 + $0x40] sm:$0xff] }
 0x2f7   :  { %v523_v55 = vpop.f32.mrf.mxu0  ;;  %v1752_v56 = vpop.f32.mrf.mxu1 }
 0x2f8   :  { %v596_v60 = vadd.f32 %v522_v49, %v452_v54  ;;  %v524_v61 = vadd.f32 %v523_v55, %v2435_v58 }
 0x2fa   :  { %v1500_v59 = vmul.f32 -1.442695, %v596_v60  ;;  %v603_v1 = vadd.f32 %v524_v61, %v453_v62 }
 0x2fc   :  { %1958 = vpow2.f32 %v1500_v59  ;;  %v1501_v43 = vmul.f32 -1.442695, %v603_v1 }
 0x2fe   :  { %1960 = vpow2.f32 %v1501_v43 }
 0x309   :  { %v1959_v41 = vpop.eup %1958 }
 0x30a   :  { %v600_v50 = vadd.f32 1.0, %v1959_v41 }
 0x30b   :  { %v1961_v51 = vpop.eup %1960 }
 0x30c   :  { %1962 = vrcp.f32 %v600_v50  ;;  %v607_v53 = vadd.f32 1.0, %v1961_v51  ;;  %v622_v51 = vld [vmem:[#allocation3 + $0x58] sm:$0xff] }
 0x30e   :  { %1964 = vrcp.f32 %v607_v53 }
 0x319   :  { %v1963_v38 = vpop.eup %1962 }
 0x31a   :  { %v610_v48 = vmul.f32 %v1963_v38, %v593_v40 }
 0x31b   :  { %v1965_v49 = vpop.eup %1964 }
 0x31c   :  { %v611_v54 = vadd.f32 %v610_v48, %v454_v57  ;;  %v613_v55 = vsub.f32 1.0, %v1965_v49  ;;  %v615_v59 = vmul.f32 %v1965_v49, %v2517_v52  ;;  %v2678_v49 = vld [vmem:[#allocation6 + $0x158] sm:$0xff] }
 0x31e   :  { %1966 = vtanh.f32 %v611_v54  ;;  %v2674_v54 = vld [vmem:[#allocation6 + $0x168] sm:$0xff] }
 0x32b   :  { %v1967_v56 = vpop.eup %1966 }
 0x32c   :  { %v614_v60 = vmul.f32 %v1967_v56, %v613_v55  ;;  %v2682_v55 = vld [vmem:[#allocation6 + $0x150] sm:$0xff]  ;;  %v2686_v56 = vld [vmem:[#allocation6 + $0x140] sm:$0xff] }
 0x32e   :  { %v2593_v43 = vadd.f32 %v615_v59, %v614_v60  ;;  %v2690_v60 = vld [vmem:[#allocation6 + $0x138] sm:$0xff]  ;;  %v2698_v59 = vld [vmem:[#allocation6 + $0x120] sm:$0xff] }
 0x330   :  { %618 = vst [vmem:[#allocation8 + $0x10] sm:$0xff] %v2593_v43  ;;  %688 = vmatmul.mubr.f32.vlgmr.msra.gmra.mxu0 %v2593_v43  ;;  %1786 = vmatmul.mubr.f32.vlgmr.msra.gmra.mxu1 %v2593_v43 }
 0x331   :  { %792 = vmatpush1.msra.mxu0 %v2201_v2  ;;  %1789 = vmatpush3.msra.mxu1 %v2235_v14  ;;  %v3052_v2 = vld [vmem:[#allocation16_spill] sm:$0xff] }
 0x332   :  { %793 = vmatprep.subr.mxu0 %v2203_v3  ;;  %1790 = vmatprep.subr.mxu1 %v3038_v0  ;;  %v3053_v3 = vld [vmem:[#allocation17_spill] sm:$0xff] }
 0x333   :  { %794 = vmatpush1.msra.mxu0 %v2206_v4  ;;  %1791 = vmatpush3.msra.mxu1 %v2241_v16  ;;  %v3054_v4 = vld [vmem:[#allocation20_spill] sm:$0xff] }
 0x334   :  { %795 = vmatprep.subr.mxu0 %v2209_v5  ;;  %1792 = vmatprep.subr.mxu1 %v3038_v0  ;;  %v3055_v5 = vld [vmem:[#allocation18_spill] sm:$0xff] }
 0x335   :  { %796 = vmatpush1.msra.mxu0 %v2212_v6  ;;  %1793 = vmatpush3.msra.mxu1 %v2247_v18  ;;  %v3056_v6 = vld [vmem:[#allocation19_spill] sm:$0xff] }
 0x336   :  { %797 = vmatprep.subr.mxu0 %v2215_v7  ;;  %1794 = vmatprep.subr.mxu1 %v3038_v0  ;;  %v3057_v7 = vld [vmem:[#allocation21_spill] sm:$0xff] }
 0x337   :  { %798 = vmatpush1.msra.mxu0 %v2218_v8  ;;  %1795 = vmatpush3.msra.mxu1 %v2257_v21  ;;  %v3058_v8 = vld [vmem:[#allocation15_spill] sm:$0xff] }
 0x338   :  { %799 = vmatprep.subr.mxu0 %v2221_v9  ;;  %1796 = vmatprep.subr.mxu1 %v3038_v0  ;;  %v620_v9 = vld [vmem:[#allocation3 + $0x48] sm:$0xff] }
 0x339   :  { %800 = vmatpush1.msra.mxu0 %v2224_v10  ;;  %1797 = vmatpush3.msra.mxu1 %v2267_v24 }
 0x33a   :  { %801 = vmatprep.subr.mxu0 %v2227_v11  ;;  %1798 = vmatprep.subr.mxu1 %v3038_v0 }
 0x33b   :  { %802 = vmatpush1.msra.mxu0 %v2230_v12  ;;  %1799 = vmatpush3.msra.mxu1 %v2277_v27  ;;  %v3059_v12 = vld [vmem:[#allocation22_spill] sm:$0xff] }
 0x33c   :  { %803 = vmatprep.subr.mxu0 %v2233_v13  ;;  %1800 = vmatprep.subr.mxu1 %v3038_v0 }
 0x33d   :  { %804 = vmatpush1.msra.mxu0 %v2238_v15  ;;  %1801 = vmatpush3.msra.mxu1 %v2287_v30 }
 0x33e   :  { %805 = vmatprep.subr.mxu0 %v2244_v17  ;;  %1802 = vmatprep.subr.mxu1 %v3038_v0 }
 0x33f   :  { %806 = vmatpush1.msra.mxu0 %v2250_v19  ;;  %1803 = vmatpush3.msra.mxu1 %v2297_v33 }
 0x340   :  { %807 = vmatprep.subr.mxu0 %v2254_v20  ;;  %1804 = vmatprep.subr.mxu1 %v3038_v0 }
 0x341   :  { %808 = vmatpush1.msra.mxu0 %v2260_v22  ;;  %1805 = vmatpush3.msra.mxu1 %v2307_v36 }
 0x342   :  { %809 = vmatprep.subr.mxu0 %v2264_v23  ;;  %1806 = vmatprep.subr.mxu1 %v3038_v0  ;;  %v621_v23 = vld [vmem:[#allocation3 + $0x50] sm:$0xff] }
 0x343   :  { %810 = vmatpush1.msra.mxu0 %v2270_v25  ;;  %1807 = vmatpush3.msra.mxu1 %v2317_v39 }
 0x344   :  { %811 = vmatprep.subr.mxu0 %v2274_v26  ;;  %1808 = vmatprep.subr.mxu1 %v3038_v0 }
 0x345   :  { %812 = vmatpush1.msra.mxu0 %v2280_v28  ;;  %1809 = vmatpush3.msra.mxu1 %v2327_v42 }
 0x346   :  { %813 = vmatprep.subr.mxu0 %v2284_v29  ;;  %1810 = vmatprep.subr.mxu1 %v3038_v0 }
 0x347   :  { %814 = vmatpush1.msra.mxu0 %v2290_v31  ;;  %1811 = vmatpush3.msra.mxu1 %v2335_v44 }
 0x348   :  { %815 = vmatprep.subr.mxu0 %v2294_v32  ;;  %1812 = vmatprep.subr.mxu1 %v3038_v0 }
 0x349   :  { %816 = vmatpush1.msra.mxu0 %v2300_v34  ;;  %1813 = vmatpush3.msra.mxu1 %v2341_v45 }
 0x34a   :  { %817 = vmatprep.subr.mxu0 %v2304_v35  ;;  %1814 = vmatprep.subr.mxu1 %v3038_v0 }
 0x34b   :  { %818 = vmatpush1.msra.mxu0 %v2310_v37  ;;  %1815 = vmatpush3.msra.mxu1 %v2346_v46 }
 0x34c   :  { %819 = vmatprep.subr.mxu0 %v3052_v2  ;;  %1816 = vmatprep.subr.mxu1 %v3038_v0 }
 0x34d   :  { %820 = vmatpush1.msra.mxu0 %v3053_v3  ;;  %1817 = vmatpush3.msra.mxu1 %v3054_v4 }
 0x34e   :  { %821 = vmatprep.subr.mxu0 %v3055_v5  ;;  %1818 = vmatprep.subr.mxu1 %v3038_v0 }
 0x34f   :  { %822 = vmatpush1.msra.mxu0 %v3056_v6  ;;  %855 = vmatprep.mubr.f32.mxu0 %v3038_v0 }
 0x350   :  { %1819 = vmatpush3.msra.mxu1 %v3057_v7  ;;  %1820 = vmatprep.mubr.msk.f32.mxu1 %vm2159_vm0, %v3038_v0 }
 0x351   :  { %959 = vmatprep.subr.mxu0 %v3058_v8  ;;  %1823 = vmatprep.subr.mxu1 %v3038_v0  ;;  %v2714_v8 = vld [vmem:[#allocation6 + $0xf0] sm:$0xff] }
 0x3f0   :  { %v689_v10 = vpop.f32.mrf.mxu0  ;;  %v760_v11 = vpop.f32.mrf.mxu1 }
 0x3f1   :  { %v690_v13 = vadd.f32 %v689_v10, %v3059_v12  ;;  %v761_v40 = vadd.f32 %v760_v11, %v2438_v47  ;;  %v2730_v10 = vld [vmem:[#allocation6 + $0xc0] sm:$0xff]  ;;  %v2738_v11 = vld [vmem:[#allocation6 + $0xa8] sm:$0xff] }
 0x3f2   :  { %v691_v15 = vpop.f32.mrf.mxu0  ;;  %v1787_v17 = vpop.f32.mrf.mxu1 }
 0x3f3   :  { %v764_v19 = vadd.f32 %v690_v13, %v620_v9  ;;  %v692_v22 = vadd.f32 %v691_v15, %v2435_v58  ;;  %v2722_v9 = vld [vmem:[#allocation6 + $0xd8] sm:$0xff]  ;;  %v2746_v13 = vld [vmem:[#allocation6 + $0x90] sm:$0xff] }
 0x3f4   :  { %v2754_v15 = vld [vmem:[#allocation6 + $0x78] sm:$0xff] }
 0x3f5   :  { %v1502_v20 = vmul.f32 -1.442695, %v764_v19  ;;  %v771_v25 = vadd.f32 %v692_v22, %v621_v23  ;;  %v790_v22 = vld [vmem:[#allocation3 + $0x70] sm:$0xff] }
 0x3f7   :  { %1968 = vpow2.f32 %v1502_v20  ;;  %v1503_v26 = vmul.f32 -1.442695, %v771_v25 }
 0x3f9   :  { %1970 = vpow2.f32 %v1503_v26 }
 0x404   :  { %v1969_v28 = vpop.eup %1968 }
 0x405   :  { %v768_v29 = vadd.f32 1.0, %v1969_v28 }
 0x406   :  { %v1971_v52 = vpop.eup %1970 }
 0x407   :  { %1972 = vrcp.f32 %v768_v29  ;;  %v775_v38 = vadd.f32 1.0, %v1971_v52 }
 0x409   :  { %1974 = vrcp.f32 %v775_v38 }
 0x414   :  { %v1973_v53 = vpop.eup %1972 }
 0x415   :  { %v778_v41 = vmul.f32 %v1973_v53, %v761_v40  ;;  %v2797_v53 = vld [vmem:[#allocation6 + $0x178] sm:$0xff] }
 0x416   :  { %v1975_v63 = vpop.eup %1974 }
 0x417   :  { %v779_v50 = vadd.f32 %v778_v41, %v622_v51  ;;  %v781_v48 = vsub.f32 1.0, %v1975_v63  ;;  %v783_v1 = vmul.f32 %v1975_v63, %v2593_v43  ;;  %v2706_v43 = vld [vmem:[#allocation6 + $0x108] sm:$0xff]  ;;  %v2803_v51 = vld [vmem:[#allocation6 + $0x160] sm:$0xff]  ;;  %v2821_v63 = vld [vmem:[#allocation6 + $0x118] sm:$0xff] }
 0x418   :  { %v2809_v41 = vld [vmem:[#allocation6 + $0x148] sm:$0xff] }
 0x419   :  { %1976 = vtanh.f32 %v779_v50  ;;  %v2815_v50 = vld [vmem:[#allocation6 + $0x130] sm:$0xff] }
 0x426   :  { %v1977_v61 = vpop.eup %1976 }
 0x427   :  { %v782_v62 = vmul.f32 %v1977_v61, %v781_v48  ;;  %v2827_v48 = vld [vmem:[#allocation6 + $0x100] sm:$0xff]  ;;  %v2833_v61 = vld [vmem:[#allocation6 + $0xe8] sm:$0xff] }
 0x429   :  { %v2669_v57 = vadd.f32 %v783_v1, %v782_v62  ;;  %v2839_v62 = vld [vmem:[#allocation6 + $0xd0] sm:$0xff]  ;;  %v2845_v1 = vld [vmem:[#allocation6 + $0xb8] sm:$0xff] }
 0x42b   :  { %786 = vst [vmem:[#allocation8 + $0x18] sm:$0xff] %v2669_v57  ;;  %856 = vmatmul.mubr.f32.vlgmr.msra.gmra.mxu0 %v2669_v57  ;;  %1821 = vmatmul.mubr.f32.vlgmr.msra.gmra.mxu1 %v2669_v57 }
 0x42c   :  { %960 = vmatpush1.msra.mxu0 %v2674_v54  ;;  %1824 = vmatpush3.msra.mxu1 %v2235_v14  ;;  %v2694_v14 = vld [vmem:[#allocation6 + $0x128] sm:$0xff] }
 0x42d   :  { %961 = vmatprep.subr.mxu0 %v2678_v49  ;;  %1825 = vmatprep.subr.mxu1 %v3038_v0 }
 0x42e   :  { %962 = vmatpush1.msra.mxu0 %v2682_v55  ;;  %1826 = vmatpush3.msra.mxu1 %v2241_v16  ;;  %v2702_v16 = vld [vmem:[#allocation6 + $0x110] sm:$0xff] }
 0x42f   :  { %963 = vmatprep.subr.mxu0 %v2686_v56  ;;  %1827 = vmatprep.subr.mxu1 %v3038_v0 }
 0x430   :  { %964 = vmatpush1.msra.mxu0 %v2690_v60  ;;  %1828 = vmatpush3.msra.mxu1 %v2247_v18  ;;  %v2710_v18 = vld [vmem:[#allocation6 + $0xf8] sm:$0xff] }
 0x431   :  { %965 = vmatprep.subr.mxu0 %v2694_v14  ;;  %1829 = vmatprep.subr.mxu1 %v3038_v0 }
 0x432   :  { %966 = vmatpush1.msra.mxu0 %v2698_v59  ;;  %1830 = vmatpush3.msra.mxu1 %v2257_v21  ;;  %v2718_v21 = vld [vmem:[#allocation6 + $0xe0] sm:$0xff] }
 0x433   :  { %967 = vmatprep.subr.mxu0 %v2702_v16  ;;  %1831 = vmatprep.subr.mxu1 %v3038_v0 }
 0x434   :  { %968 = vmatpush1.msra.mxu0 %v2706_v43  ;;  %1832 = vmatpush3.msra.mxu1 %v2267_v24  ;;  %v2726_v24 = vld [vmem:[#allocation6 + $0xc8] sm:$0xff] }
 0x435   :  { %969 = vmatprep.subr.mxu0 %v2710_v18  ;;  %1833 = vmatprep.subr.mxu1 %v3038_v0 }
 0x436   :  { %970 = vmatpush1.msra.mxu0 %v2714_v8  ;;  %1834 = vmatpush3.msra.mxu1 %v2277_v27  ;;  %v2734_v27 = vld [vmem:[#allocation6 + $0xb0] sm:$0xff] }
 0x437   :  { %971 = vmatprep.subr.mxu0 %v2718_v21  ;;  %1835 = vmatprep.subr.mxu1 %v3038_v0 }
 0x438   :  { %972 = vmatpush1.msra.mxu0 %v2722_v9  ;;  %1836 = vmatpush3.msra.mxu1 %v2287_v30  ;;  %v2742_v30 = vld [vmem:[#allocation6 + $0x98] sm:$0xff] }
 0x439   :  { %973 = vmatprep.subr.mxu0 %v2726_v24  ;;  %1837 = vmatprep.subr.mxu1 %v3038_v0 }
 0x43a   :  { %974 = vmatpush1.msra.mxu0 %v2730_v10  ;;  %1838 = vmatpush3.msra.mxu1 %v2297_v33  ;;  %v2750_v33 = vld [vmem:[#allocation6 + $0x80] sm:$0xff] }
 0x43b   :  { %975 = vmatprep.subr.mxu0 %v2734_v27  ;;  %1839 = vmatprep.subr.mxu1 %v3038_v0 }
 0x43c   :  { %976 = vmatpush1.msra.mxu0 %v2738_v11  ;;  %1840 = vmatpush3.msra.mxu1 %v2307_v36  ;;  %v2758_v36 = vld [vmem:[#allocation6 + $0x68] sm:$0xff] }
 0x43d   :  { %977 = vmatprep.subr.mxu0 %v2742_v30  ;;  %1841 = vmatprep.subr.mxu1 %v3038_v0 }
 0x43e   :  { %978 = vmatpush1.msra.mxu0 %v2746_v13  ;;  %1842 = vmatpush3.msra.mxu1 %v2317_v39 }
 0x43f   :  { %979 = vmatprep.subr.mxu0 %v2750_v33  ;;  %1843 = vmatprep.subr.mxu1 %v3038_v0 }
 0x440   :  { %980 = vmatpush1.msra.mxu0 %v2754_v15  ;;  %1844 = vmatpush3.msra.mxu1 %v2327_v42 }
 0x441   :  { %981 = vmatprep.subr.mxu0 %v2758_v36  ;;  %1845 = vmatprep.subr.mxu1 %v3038_v0 }
 0x442   :  { %982 = vmatpush1.msra.mxu0 %v2290_v31  ;;  %1846 = vmatpush3.msra.mxu1 %v2335_v44  ;;  %v2783_v31 = vld [vmem:[#allocation6 + $0x170] sm:$0xff] }
 0x443   :  { %983 = vmatprep.subr.mxu0 %v2294_v32  ;;  %1847 = vmatprep.subr.mxu1 %v3038_v0  ;;  %v788_v32 = vld [vmem:[#allocation3 + $0x60] sm:$0xff] }
 0x444   :  { %984 = vmatpush1.msra.mxu0 %v2300_v34  ;;  %1848 = vmatpush3.msra.mxu1 %v2341_v45 }
 0x445   :  { %985 = vmatprep.subr.mxu0 %v2304_v35  ;;  %1849 = vmatprep.subr.mxu1 %v3038_v0 }
 0x446   :  { %986 = vmatpush1.msra.mxu0 %v2310_v37  ;;  %1850 = vmatpush3.msra.mxu1 %v2346_v46 }
 0x447   :  { %987 = vmatprep.subr.mxu0 %v3052_v2  ;;  %1851 = vmatprep.subr.mxu1 %v3038_v0  ;;  %v789_v2 = vld [vmem:[#allocation3 + $0x68] sm:$0xff] }
 0x448   :  { %988 = vmatpush1.msra.mxu0 %v3053_v3  ;;  %1852 = vmatpush3.msra.mxu1 %v3054_v4 }
 0x449   :  { %989 = vmatprep.subr.mxu0 %v3055_v5  ;;  %1853 = vmatprep.subr.mxu1 %v3038_v0 }
 0x44a   :  { %990 = vmatpush1.msra.mxu0 %v3056_v6  ;;  %1023 = vmatprep.mubr.f32.mxu0 %v3038_v0 }
 0x44b   :  { %1854 = vmatpush3.msra.mxu1 %v3057_v7  ;;  %1855 = vmatprep.mubr.msk.f32.mxu1 %vm2159_vm0, %v3038_v0 }
 0x44c   :  { %1127 = vmatprep.subr.mxu0 %v2783_v31  ;;  %1858 = vmatprep.subr.mxu1 %v3038_v0 }
 0x4eb   :  { %v857_v34 = vpop.f32.mrf.mxu0  ;;  %v928_v35 = vpop.f32.mrf.mxu1 }
 0x4ec   :  { %v858_v37 = vadd.f32 %v857_v34, %v3059_v12  ;;  %v929_v19 = vadd.f32 %v928_v35, %v2438_v47  ;;  %v2862_v34 = vld [vmem:[#allocation6 + $0x60] sm:$0xff]  ;;  %v2865_v35 = vld [vmem:[#allocation6 + $0x70] sm:$0xff] }
 0x4ed   :  { %v859_v39 = vpop.f32.mrf.mxu0  ;;  %v1822_v42 = vpop.f32.mrf.mxu1 }
 0x4ee   :  { %v932_v44 = vadd.f32 %v858_v37, %v788_v32  ;;  %v860_v46 = vadd.f32 %v859_v39, %v2435_v58  ;;  %v2857_v32 = vld [vmem:[#allocation6 + $0x88] sm:$0xff]  ;;  %v2868_v37 = vld [vmem:[#allocation6 + $0x50] sm:$0xff]  ;;  %v2875_v42 = vld [vmem:[#allocation6 + $0x58] sm:$0xff] }
 0x4ef   :  { %v2872_v39 = vld [vmem:[#allocation6 + $0x48] sm:$0xff] }
 0x4f0   :  { %v1504_v45 = vmul.f32 -1.442695, %v932_v44  ;;  %v939_v3 = vadd.f32 %v860_v46, %v789_v2  ;;  %v2878_v44 = vld [vmem:[#allocation6 + $0x38] sm:$0xff]  ;;  %v2885_v46 = vld [vmem:[#allocation6 + $0x40] sm:$0xff] }
 0x4f1   :  { %v2888_v2 = vld [vmem:[#allocation6 + $0x20] sm:$0xff] }
 0x4f2   :  { %1978 = vpow2.f32 %v1504_v45  ;;  %v1505_v4 = vmul.f32 -1.442695, %v939_v3  ;;  %v2882_v45 = vld [vmem:[#allocation6 + $0x30] sm:$0xff]  ;;  %3060 = vst [vmem:[#allocation16_spill] sm:$0xff] %v2888_v2  ;;  %v2892_v3 = vld [vmem:[#allocation6 + $0x18] sm:$0xff] }
 0x4f3   :  { %3061 = vst [vmem:[#allocation17_spill] sm:$0xff] %v2892_v3 }
 0x4f4   :  { %1980 = vpow2.f32 %v1505_v4  ;;  %v2895_v4 = vld [vmem:[#allocation6 + $0x28] sm:$0xff] }
 0x4f5   :  { %3062 = vst [vmem:[#allocation20_spill] sm:$0xff] %v2895_v4 }
 0x4ff   :  { %v1979_v5 = vpop.eup %1978 }
 0x500   :  { %v936_v6 = vadd.f32 1.0, %v1979_v5  ;;  %v2898_v5 = vld [vmem:[#allocation6 + $0x8] sm:$0xff] }
 0x501   :  { %v1981_v7 = vpop.eup %1980  ;;  %3063 = vst [vmem:[#allocation18_spill] sm:$0xff] %v2898_v5 }
 0x502   :  { %1982 = vrcp.f32 %v936_v6  ;;  %v943_v17 = vadd.f32 1.0, %v1981_v7  ;;  %v2902_v6 = vld [vmem:[#allocation6] sm:$0xff]  ;;  %v2906_v7 = vld [vmem:[#allocation6 + $0x10] sm:$0xff] }
 0x503   :  { %3064 = vst [vmem:[#allocation19_spill] sm:$0xff] %v2902_v6  ;;  %3065 = vst [vmem:[#allocation21_spill] sm:$0xff] %v2906_v7 }
 0x504   :  { %1984 = vrcp.f32 %v943_v17  ;;  %v956_v17 = vld [vmem:[#allocation3 + $0x78] sm:$0xff] }
 0x50f   :  { %v1983_v20 = vpop.eup %1982 }
 0x510   :  { %v946_v23 = vmul.f32 %v1983_v20, %v929_v19 }
 0x511   :  { %v1985_v26 = vpop.eup %1984 }
 0x512   :  { %v947_v25 = vadd.f32 %v946_v23, %v790_v22  ;;  %v949_v28 = vsub.f32 1.0, %v1985_v26  ;;  %v951_v38 = vmul.f32 %v1985_v26, %v2669_v57  ;;  %v2851_v57 = vld [vmem:[#allocation6 + $0xa0] sm:$0xff] }
 0x514   :  { %1986 = vtanh.f32 %v947_v25 }
 0x521   :  { %v1987_v29 = vpop.eup %1986 }
 0x522   :  { %v950_v52 = vmul.f32 %v1987_v29, %v949_v28 }
 0x524   :  { %v2791_v40 = vadd.f32 %v951_v38, %v950_v52  ;;  %v957_v52 = vld [vmem:[#allocation3 + $0x80] sm:$0xff] }
 0x526   :  { %954 = vst [vmem:[#allocation8 + $0x20] sm:$0xff] %v2791_v40  ;;  %1024 = vmatmul.mubr.f32.vlgmr.msra.gmra.mxu0 %v2791_v40  ;;  %1856 = vmatmul.mubr.f32.vlgmr.msra.gmra.mxu1 %v2791_v40 }
 0x527   :  { %1128 = vmatpush1.msra.mxu0 %v2674_v54  ;;  %1859 = vmatpush3.msra.mxu1 %v2797_v53 }
 0x528   :  { %1129 = vmatprep.subr.mxu0 %v2678_v49  ;;  %1860 = vmatprep.subr.mxu1 %v3038_v0 }
 0x529   :  { %1130 = vmatpush1.msra.mxu0 %v2682_v55  ;;  %1861 = vmatpush3.msra.mxu1 %v2803_v51 }
 0x52a   :  { %1131 = vmatprep.subr.mxu0 %v2686_v56  ;;  %1862 = vmatprep.subr.mxu1 %v3038_v0 }
 0x52b   :  { %1132 = vmatpush1.msra.mxu0 %v2690_v60  ;;  %1863 = vmatpush3.msra.mxu1 %v2809_v41 }
 0x52c   :  { %1133 = vmatprep.subr.mxu0 %v2694_v14  ;;  %1864 = vmatprep.subr.mxu1 %v3038_v0 }
 0x52d   :  { %1134 = vmatpush1.msra.mxu0 %v2698_v59  ;;  %1865 = vmatpush3.msra.mxu1 %v2815_v50 }
 0x52e   :  { %1135 = vmatprep.subr.mxu0 %v2702_v16  ;;  %1866 = vmatprep.subr.mxu1 %v3038_v0 }
 0x52f   :  { %1136 = vmatpush1.msra.mxu0 %v2706_v43  ;;  %1867 = vmatpush3.msra.mxu1 %v2821_v63 }
 0x530   :  { %1137 = vmatprep.subr.mxu0 %v2710_v18  ;;  %1868 = vmatprep.subr.mxu1 %v3038_v0 }
 0x531   :  { %1138 = vmatpush1.msra.mxu0 %v2714_v8  ;;  %1869 = vmatpush3.msra.mxu1 %v2827_v48 }
 0x532   :  { %1139 = vmatprep.subr.mxu0 %v2718_v21  ;;  %1870 = vmatprep.subr.mxu1 %v3038_v0 }
 0x533   :  { %1140 = vmatpush1.msra.mxu0 %v2722_v9  ;;  %1871 = vmatpush3.msra.mxu1 %v2833_v61 }
 0x534   :  { %1141 = vmatprep.subr.mxu0 %v2726_v24  ;;  %1872 = vmatprep.subr.mxu1 %v3038_v0 }
 0x535   :  { %1142 = vmatpush1.msra.mxu0 %v2730_v10  ;;  %1873 = vmatpush3.msra.mxu1 %v2839_v62 }
 0x536   :  { %1143 = vmatprep.subr.mxu0 %v2734_v27  ;;  %1874 = vmatprep.subr.mxu1 %v3038_v0 }
 0x537   :  { %1144 = vmatpush1.msra.mxu0 %v2738_v11  ;;  %1875 = vmatpush3.msra.mxu1 %v2845_v1 }
 0x538   :  { %1145 = vmatprep.subr.mxu0 %v2742_v30  ;;  %1876 = vmatprep.subr.mxu1 %v3038_v0 }
 0x539   :  { %1146 = vmatpush1.msra.mxu0 %v2746_v13  ;;  %1877 = vmatpush3.msra.mxu1 %v2851_v57 }
 0x53a   :  { %1147 = vmatprep.subr.mxu0 %v2750_v33  ;;  %1878 = vmatprep.subr.mxu1 %v3038_v0 }
 0x53b   :  { %1148 = vmatpush1.msra.mxu0 %v2754_v15  ;;  %1879 = vmatpush3.msra.mxu1 %v2857_v32 }
 0x53c   :  { %1149 = vmatprep.subr.mxu0 %v2758_v36  ;;  %1880 = vmatprep.subr.mxu1 %v3038_v0 }
 0x53d   :  { %1150 = vmatpush1.msra.mxu0 %v2862_v34  ;;  %1881 = vmatpush3.msra.mxu1 %v2865_v35 }
 0x53e   :  { %1151 = vmatprep.subr.mxu0 %v2868_v37  ;;  %1882 = vmatprep.subr.mxu1 %v3038_v0 }
 0x53f   :  { %1152 = vmatpush1.msra.mxu0 %v2872_v39  ;;  %1883 = vmatpush3.msra.mxu1 %v2875_v42 }
 0x540   :  { %1153 = vmatprep.subr.mxu0 %v2878_v44  ;;  %1884 = vmatprep.subr.mxu1 %v3038_v0 }
 0x541   :  { %1154 = vmatpush1.msra.mxu0 %v2882_v45  ;;  %1885 = vmatpush3.msra.mxu1 %v2885_v46 }
 0x542   :  { %1155 = vmatprep.subr.mxu0 %v2888_v2  ;;  %1886 = vmatprep.subr.mxu1 %v3038_v0 }
 0x543   :  { %1156 = vmatpush1.msra.mxu0 %v2892_v3  ;;  %1887 = vmatpush3.msra.mxu1 %v2895_v4 }
 0x544   :  { %1157 = vmatprep.subr.mxu0 %v2898_v5  ;;  %1888 = vmatprep.subr.mxu1 %v3038_v0 }
 0x545   :  { %1158 = vmatpush1.msra.mxu0 %v2902_v6  ;;  %1191 = vmatprep.mubr.f32.mxu0 %v3038_v0 }
 0x546   :  { %1889 = vmatpush3.msra.mxu1 %v2906_v7  ;;  %1890 = vmatprep.mubr.msk.f32.mxu1 %vm2159_vm0, %v3038_v0 }
 0x547   :  { %1295 = vmatprep.subr.mxu0 %v2783_v31  ;;  %1893 = vmatprep.subr.mxu1 %v3038_v0 }
 0x5e6   :  { %v1025_v19 = vpop.f32.mrf.mxu0  ;;  %v1096_v20 = vpop.f32.mrf.mxu1 }
 0x5e7   :  { %v1026_v22 = vadd.f32 %v1025_v19, %v3059_v12  ;;  %v1097_v3 = vadd.f32 %v1096_v20, %v2438_v47  ;;  %v958_v19 = vld [vmem:[#allocation3 + $0x88] sm:$0xff] }
 0x5e8   :  { %v1027_v23 = vpop.f32.mrf.mxu0  ;;  %v1857_v25 = vpop.f32.mrf.mxu1 }
 0x5e9   :  { %v1100_v26 = vadd.f32 %v1026_v22, %v956_v17  ;;  %v1028_v29 = vadd.f32 %v1027_v23, %v2435_v58 }
 0x5eb   :  { %v1506_v28 = vmul.f32 -1.442695, %v1100_v26  ;;  %v1107_v38 = vadd.f32 %v1028_v29, %v957_v52 }
 0x5ed   :  { %1988 = vpow2.f32 %v1506_v28  ;;  %v1507_v7 = vmul.f32 -1.442695, %v1107_v38  ;;  %v1294_v38 = vld [vmem:[#allocation3 + $0xb8] sm:$0xff] }
 0x5ef   :  { %1990 = vpow2.f32 %v1507_v7 }
 0x5fa   :  { %v1989_v6 = vpop.eup %1988 }
 0x5fb   :  { %v1104_v31 = vadd.f32 1.0, %v1989_v6 }
 0x5fc   :  { %v1991_v5 = vpop.eup %1990 }
 0x5fd   :  { %1992 = vrcp.f32 %v1104_v31  ;;  %v1111_v4 = vadd.f32 1.0, %v1991_v5 }
 0x5ff   :  { %1994 = vrcp.f32 %v1111_v4 }
 0x60a   :  { %v1993_v2 = vpop.eup %1992 }
 0x60b   :  { %v1114_v12 = vmul.f32 %v1993_v2, %v1097_v3 }
 0x60c   :  { %v1995_v22 = vpop.eup %1994 }
 0x60d   :  { %v1115_v17 = vadd.f32 %v1114_v12, %v958_v19  ;;  %v1117_v23 = vsub.f32 1.0, %v1995_v22  ;;  %v1119_v28 = vmul.f32 %v1995_v22, %v2791_v40  ;;  %v3066_v12 = vld [vmem:[#allocation16_spill] sm:$0xff] }
 0x60f   :  { %1996 = vtanh.f32 %v1115_v17 }
 0x61c   :  { %v1997_v25 = vpop.eup %1996 }
 0x61d   :  { %v1118_v26 = vmul.f32 %v1997_v25, %v1117_v23 }
 0x61f   :  { %v2917_v7 = vadd.f32 %v1119_v28, %v1118_v26 }
 0x621   :  { %1122 = vst [vmem:[#allocation8 + $0x28] sm:$0xff] %v2917_v7  ;;  %1192 = vmatmul.mubr.f32.vlgmr.msra.gmra.mxu0 %v2917_v7  ;;  %1891 = vmatmul.mubr.f32.vlgmr.msra.gmra.mxu1 %v2917_v7 }
 0x622   :  { %1296 = vmatpush1.msra.mxu0 %v2674_v54  ;;  %1894 = vmatpush3.msra.mxu1 %v2797_v53  ;;  %v3067_v54 = vld [vmem:[#allocation17_spill] sm:$0xff]  ;;  %v1126_v53 = vld [vmem:[#allocation3 + $0xa0] sm:$0xff] }
 0x623   :  { %1297 = vmatprep.subr.mxu0 %v2678_v49  ;;  %1895 = vmatprep.subr.mxu1 %v3038_v0  ;;  %v3068_v49 = vld [vmem:[#allocation20_spill] sm:$0xff] }
 0x624   :  { %1298 = vmatpush1.msra.mxu0 %v2682_v55  ;;  %1896 = vmatpush3.msra.mxu1 %v2803_v51  ;;  %v3069_v55 = vld [vmem:[#allocation18_spill] sm:$0xff] }
 0x625   :  { %1299 = vmatprep.subr.mxu0 %v2686_v56  ;;  %1897 = vmatprep.subr.mxu1 %v3038_v0  ;;  %v3070_v56 = vld [vmem:[#allocation19_spill] sm:$0xff] }
 0x626   :  { %1300 = vmatpush1.msra.mxu0 %v2690_v60  ;;  %1898 = vmatpush3.msra.mxu1 %v2809_v41  ;;  %v3071_v60 = vld [vmem:[#allocation21_spill] sm:$0xff] }
 0x627   :  { %1301 = vmatprep.subr.mxu0 %v2694_v14  ;;  %1899 = vmatprep.subr.mxu1 %v3038_v0  ;;  %v1124_v14 = vld [vmem:[#allocation3 + $0x90] sm:$0xff] }
 0x628   :  { %1302 = vmatpush1.msra.mxu0 %v2698_v59  ;;  %1900 = vmatpush3.msra.mxu1 %v2815_v50 }
 0x629   :  { %1303 = vmatprep.subr.mxu0 %v2702_v16  ;;  %1901 = vmatprep.subr.mxu1 %v3038_v0 }
 0x62a   :  { %1304 = vmatpush1.msra.mxu0 %v2706_v43  ;;  %1902 = vmatpush3.msra.mxu1 %v2821_v63  ;;  %v3072_v43 = vld [vmem:[#allocation22_spill] sm:$0xff] }
 0x62b   :  { %1305 = vmatprep.subr.mxu0 %v2710_v18  ;;  %1903 = vmatprep.subr.mxu1 %v3038_v0 }
 0x62c   :  { %1306 = vmatpush1.msra.mxu0 %v2714_v8  ;;  %1904 = vmatpush3.msra.mxu1 %v2827_v48 }
 0x62d   :  { %1307 = vmatprep.subr.mxu0 %v2718_v21  ;;  %1905 = vmatprep.subr.mxu1 %v3038_v0 }
 0x62e   :  { %1308 = vmatpush1.msra.mxu0 %v2722_v9  ;;  %1906 = vmatpush3.msra.mxu1 %v2833_v61 }
 0x62f   :  { %1309 = vmatprep.subr.mxu0 %v2726_v24  ;;  %1907 = vmatprep.subr.mxu1 %v3038_v0 }
 0x630   :  { %1310 = vmatpush1.msra.mxu0 %v2730_v10  ;;  %1908 = vmatpush3.msra.mxu1 %v2839_v62 }
 0x631   :  { %1311 = vmatprep.subr.mxu0 %v2734_v27  ;;  %1909 = vmatprep.subr.mxu1 %v3038_v0  ;;  %v1125_v27 = vld [vmem:[#allocation3 + $0x98] sm:$0xff] }
 0x632   :  { %1312 = vmatpush1.msra.mxu0 %v2738_v11  ;;  %1910 = vmatpush3.msra.mxu1 %v2845_v1 }
 0x633   :  { %1313 = vmatprep.subr.mxu0 %v2742_v30  ;;  %1911 = vmatprep.subr.mxu1 %v3038_v0 }
 0x634   :  { %1314 = vmatpush1.msra.mxu0 %v2746_v13  ;;  %1912 = vmatpush3.msra.mxu1 %v2851_v57  ;;  %v1292_v57 = vld [vmem:[#allocation3 + $0xa8] sm:$0xff] }
 0x635   :  { %1315 = vmatprep.subr.mxu0 %v2750_v33  ;;  %1913 = vmatprep.subr.mxu1 %v3038_v0 }
 0x636   :  { %1316 = vmatpush1.msra.mxu0 %v2754_v15  ;;  %1914 = vmatpush3.msra.mxu1 %v2857_v32 }
 0x637   :  { %1317 = vmatprep.subr.mxu0 %v2758_v36  ;;  %1915 = vmatprep.subr.mxu1 %v3038_v0 }
 0x638   :  { %1318 = vmatpush1.msra.mxu0 %v2862_v34  ;;  %1916 = vmatpush3.msra.mxu1 %v2865_v35 }
 0x639   :  { %1319 = vmatprep.subr.mxu0 %v2868_v37  ;;  %1917 = vmatprep.subr.mxu1 %v3038_v0 }
 0x63a   :  { %1320 = vmatpush1.msra.mxu0 %v2872_v39  ;;  %1918 = vmatpush3.msra.mxu1 %v2875_v42 }
 0x63b   :  { %1321 = vmatprep.subr.mxu0 %v2878_v44  ;;  %1919 = vmatprep.subr.mxu1 %v3038_v0 }
 0x63c   :  { %1322 = vmatpush1.msra.mxu0 %v2882_v45  ;;  %1920 = vmatpush3.msra.mxu1 %v2885_v46  ;;  %v1293_v46 = vld [vmem:[#allocation3 + $0xb0] sm:$0xff] }
 0x63d   :  { %1323 = vmatprep.subr.mxu0 %v3066_v12  ;;  %1921 = vmatprep.subr.mxu1 %v3038_v0 }
 0x63e   :  { %1324 = vmatpush1.msra.mxu0 %v3067_v54  ;;  %1922 = vmatpush3.msra.mxu1 %v3068_v49 }
 0x63f   :  { %1325 = vmatprep.subr.mxu0 %v3069_v55  ;;  %1923 = vmatprep.subr.mxu1 %v3038_v0 }
 0x640   :  { %1326 = vmatpush1.msra.mxu0 %v3070_v56  ;;  %1359 = vmatprep.mubr.f32.mxu0 %v3038_v0 }
 0x641   :  { %1924 = vmatpush3.msra.mxu1 %v3071_v60  ;;  %1925 = vmatprep.mubr.msk.f32.mxu1 %vm2159_vm0, %v3038_v0 }
 0x6e1   :  { %v1193_v59 = vpop.f32.mrf.mxu0  ;;  %v1264_v16 = vpop.f32.mrf.mxu1 }
 0x6e2   :  { %v1194_v18 = vadd.f32 %v1193_v59, %v3072_v43  ;;  %v1265_v36 = vadd.f32 %v1264_v16, %v2438_v47 }
 0x6e3   :  { %v1195_v8 = vpop.f32.mrf.mxu0  ;;  %v1892_v21 = vpop.f32.mrf.mxu1 }
 0x6e4   :  { %v1268_v9 = vadd.f32 %v1194_v18, %v1124_v14  ;;  %v1196_v10 = vadd.f32 %v1195_v8, %v2435_v58 }
 0x6e6   :  { %v1508_v24 = vmul.f32 -1.442695, %v1268_v9  ;;  %v1275_v11 = vadd.f32 %v1196_v10, %v1125_v27 }
 0x6e8   :  { %1998 = vpow2.f32 %v1508_v24  ;;  %v1509_v30 = vmul.f32 -1.442695, %v1275_v11 }
 0x6ea   :  { %2000 = vpow2.f32 %v1509_v30 }
 0x6f5   :  { %v1999_v13 = vpop.eup %1998 }
 0x6f6   :  { %v1272_v33 = vadd.f32 1.0, %v1999_v13 }
 0x6f7   :  { %v2001_v0 = vpop.eup %2000 }
 0x6f8   :  { %2002 = vrcp.f32 %v1272_v33  ;;  %v1279_v15 = vadd.f32 1.0, %v2001_v0 }
 0x6fa   :  { %2004 = vrcp.f32 %v1279_v15 }
 0x705   :  { %v2003_v40 = vpop.eup %2002 }
 0x706   :  { %v1282_v51 = vmul.f32 %v2003_v40, %v1265_v36 }
 0x707   :  { %v2005_v50 = vpop.eup %2004 }
 0x708   :  { %v1283_v41 = vadd.f32 %v1282_v51, %v1126_v53  ;;  %v1285_v63 = vsub.f32 1.0, %v2005_v50  ;;  %v1287_v62 = vmul.f32 %v2005_v50, %v2917_v7 }
 0x70a   :  { %2006 = vtanh.f32 %v1283_v41 }
 0x717   :  { %v2007_v48 = vpop.eup %2006 }
 0x718   :  { %v1286_v61 = vmul.f32 %v2007_v48, %v1285_v63 }
 0x71a   :  { %v1288_v1 = vadd.f32 %v1287_v62, %v1286_v61 }
 0x71c   :  { %1290 = vst [vmem:[#allocation8 + $0x30] sm:$0xff] %v1288_v1  ;;  %1360 = vmatmul.mubr.f32.vlgmr.msra.gmra.mxu0 %v1288_v1  ;;  %1926 = vmatmul.mubr.f32.vlgmr.msra.gmra.mxu1 %v1288_v1 }
 0x7dc   :  { %v1361_v32 = vpop.f32.mrf.mxu0  ;;  %v1432_v34 = vpop.f32.mrf.mxu1 }
 0x7dd   :  { %v1362_v35 = vadd.f32 %v1361_v32, %v3072_v43  ;;  %v1433_v29 = vadd.f32 %v1432_v34, %v2438_v47 }
 0x7de   :  { %v1363_v37 = vpop.f32.mrf.mxu0  ;;  %v1927_v39 = vpop.f32.mrf.mxu1 }
 0x7df   :  { %v1436_v42 = vadd.f32 %v1362_v35, %v1292_v57  ;;  %v1364_v45 = vadd.f32 %v1363_v37, %v2435_v58 }
 0x7e1   :  { %v1510_v44 = vmul.f32 -1.442695, %v1436_v42  ;;  %v1443_v2 = vadd.f32 %v1364_v45, %v1293_v46 }
 0x7e3   :  { %2008 = vpow2.f32 %v1510_v44  ;;  %v1511_v3 = vmul.f32 -1.442695, %v1443_v2 }
 0x7e5   :  { %2010 = vpow2.f32 %v1511_v3 }
 0x7f0   :  { %v2009_v4 = vpop.eup %2008 }
 0x7f1   :  { %v1440_v5 = vadd.f32 1.0, %v2009_v4 }
 0x7f2   :  { %v2011_v6 = vpop.eup %2010 }
 0x7f3   :  { %2012 = vrcp.f32 %v1440_v5  ;;  %v1447_v20 = vadd.f32 1.0, %v2011_v6 }
 0x7f5   :  { %2014 = vrcp.f32 %v1447_v20 }
 0x800   :  { %v2013_v52 = vpop.eup %2012 }
 0x801   :  { %v1450_v31 = vmul.f32 %v2013_v52, %v1433_v29 }
 0x802   :  { %v2015_v17 = vpop.eup %2014 }
 0x803   :  { %v1451_v19 = vadd.f32 %v1450_v31, %v1294_v38  ;;  %v1453_v58 = vsub.f32 1.0, %v2015_v17  ;;  %v1455_v25 = vmul.f32 %v2015_v17, %v1288_v1 }
 0x805   :  { %2016 = vtanh.f32 %v1451_v19 }
 0x812   :  { %v2017_v22 = vpop.eup %2016 }
 0x813   :  { %v1454_v23 = vmul.f32 %v2017_v22, %v1453_v58 }
 0x815   :  { %v1456_v26 = vadd.f32 %v1455_v25, %v1454_v23 }
 0x817   :  { %1458 = vst [vmem:[#allocation8 + $0x38] sm:$0xff] %v1456_v26  ;;  %1463 = vst [vmem:[#allocation9] sm:$0xff] %v1456_v26 }
 0x818   :  { %2117 = shalt.err (!%p2114_p0)
}
 0x819   :  { %s2162_s5 = smov 128   ;;  %s2163_s6 = smov 8  }
 0x81a   :  { %1475 = dma.vmem_to_hbm [thread:$0]  %s1470_s27, 1024, %s3003_s3, [#allocation5], %s2162_s5, %s2162_s5, %s2163_s6  }
 0x81b   :  { %s2126_s9 = scalar_lea.vmem %s1483_s29, 128  ;;  %p2131_p2 = scmp.lt.s32.totalorder %s1483_s29, %s1483_s29 }
 0x81c   :  { %p2127_p1 = scmp.ne.s32.totalorder %s1483_s29, %s2126_s9  ;;  %p2132_p3 = scmp.lt.s32.totalorder %s2126_s9, %s2126_s9 }
 0x81e   :  { %p2133_p4 = por %p2132_p3, %p2131_p2 }
 0x820   :  { %p2134_p5 = pnand %p2133_p4, %p2127_p1 }
 0x822   :  { %2137 = shalt.err (!%p2134_p5)
}
 0x823   :  { %1485 = dma.vmem_to_hbm [thread:$0]  %s1483_s29, 128, %s3004_s4, [#allocation10]  }
 0x824   :  { %2150 = dma.done.wait [#allocation5], 1024  }
 0x825   :  { %2151 = vsyncadd [#allocation5], 4294966272 }
 0x826   :  { %2152 = dma.done.wait [#allocation10], 128  }
 0x827   :  { %2153 = vsyncadd [#allocation10], 4294967168 }
 0x828   :  { %1492 = vsyncpa [#allocation4], 1 }
 0x829   :  { %1493 = vsyncpa [#allocation7], 1 }
 0x82a   :  { %1494 = vsyncpa [#allocation5], 1 }
 0x82b   :  { %1495 = vsyncpa [#allocation10], 1 }

</bundles_post_ra>
